<compile_context>
chip_gen: v7x
topology: tpu7x:2x2x1
jax: 0.10.0
libtpu: 0.0.40
codegen_flags: <defaults>
</compile_context>

<pallas_src>
import functools
import math

import jax
import jax.numpy as jnp
from jax.experimental import pallas as pl
from jax.experimental.pallas import tpu as pltpu

# ----------------------------- tiny BERT config ------------------------------
VOCAB_SIZE = 100
MAX_POS = 16
TYPE_VOCAB = 2
HIDDEN = 32
NUM_HEADS = 2
HEAD_DIM = HIDDEN // NUM_HEADS
NUM_LAYERS = 2
INTERMEDIATE = 64
CLS_HIDDEN = 512
NUM_CLASSES = 5
LN_EPS = 1e-12


def _vmem():
    return pl.BlockSpec(memory_space=pltpu.MemorySpace.VMEM)


# ------------------------------ fused Pallas kernel ---------------------------
def _bert_fused_kernel(
    ids_ref, tt_ref, mask_ref,
    wemb_ref, pemb_ref, temb_ref, eg_ref, eb_ref,
    wq_ref, bq_ref, wk_ref, bk_ref, wv_ref, bv_ref, wo_ref, bo_ref,
    g1_ref, b1_ref,
    wi_ref, bi_ref, wout_ref, bout_ref, g2_ref, b2_ref,
    wc1_ref, bc1_ref, wc2_ref, bc2_ref,
    o_ref, *, batch, seq,
):
    bs = batch * seq
    scale = 1.0 / math.sqrt(HEAD_DIM)

    def layernorm(h, g, b):
        mu = jnp.mean(h, axis=-1, keepdims=True)
        var = jnp.mean(jnp.square(h - mu), axis=-1, keepdims=True)
        return (h - mu) * jax.lax.rsqrt(var + LN_EPS) * g + b

    # --- embeddings, fully in-kernel: one-hot matmul "gather" on the MXU ---
    ids = ids_ref[...]                                              # (B*S, 1) int32
    tt = tt_ref[...]                                                # (B*S, 1) int32
    word_oh = jnp.where(
        ids == jax.lax.broadcasted_iota(jnp.int32, (bs, VOCAB_SIZE), 1), 1.0, 0.0)
    type_oh = jnp.where(
        tt == jax.lax.broadcasted_iota(jnp.int32, (bs, TYPE_VOCAB), 1), 1.0, 0.0)
    x = jnp.dot(word_oh, wemb_ref[...], preferred_element_type=jnp.float32)
    x = x + jnp.dot(type_oh, temb_ref[...], preferred_element_type=jnp.float32)
    # positions are 0..S-1 per row: static slice of the position table, tiled.
    pos = jnp.broadcast_to(pemb_ref[0:seq, :][None, :, :], (batch, seq, HIDDEN))
    x = x + pos.reshape(bs, HIDDEN)
    x = layernorm(x, eg_ref[...], eb_ref[...])                      # (B*S, H)

    # --- additive attention mask: keep (B, 1, S); broadcast fuses into the add ---
    neg = (1.0 - mask_ref[...]) * (-1e9)                            # (B, 1, S)

    # --- encoder layers, fully unrolled (NUM_LAYERS == 2) ---
    for l in range(NUM_LAYERS):
        # Heads via per-head weight blocks: no lane slices of activations and no
        # lane-dim concat; Wo row-blocks accumulate the heads back into HIDDEN.
        attn = None
        for h in range(NUM_HEADS):
            qh = jnp.dot(x, wq_ref[l, h], preferred_element_type=jnp.float32) + bq_ref[l, h]
            kh = jnp.dot(x, wk_ref[l, h], preferred_element_type=jnp.float32) + bk_ref[l, h]
            vh = jnp.dot(x, wv_ref[l, h], preferred_element_type=jnp.float32) + bv_ref[l, h]
            q3 = qh.reshape(batch, seq, HEAD_DIM)                   # layout-preserving at S=8
            k3 = kh.reshape(batch, seq, HEAD_DIM)
            v3 = vh.reshape(batch, seq, HEAD_DIM)
            s = jnp.einsum("bqd,bkd->bqk", q3, k3,
                           preferred_element_type=jnp.float32)      # (B, S, S)
            s = s * scale + neg                                     # implicit (B,1,S) bcast
            s = s - jnp.max(s, axis=-1, keepdims=True)
            p = jnp.exp(s)
            p = p / jnp.sum(p, axis=-1, keepdims=True)              # exact softmax denom
            c3 = jnp.einsum("bqk,bkd->bqd", p, v3,
                            preferred_element_type=jnp.float32)     # (B, S, HD)
            contrib = jnp.dot(c3.reshape(bs, HEAD_DIM), wo_ref[l, h],
                              preferred_element_type=jnp.float32)   # (B*S, H)
            attn = contrib if attn is None else attn + contrib
        attn = attn + bo_ref[l]
        x = layernorm(attn + x, g1_ref[l], b1_ref[l])

        # FFN + residual + LayerNorm
        ffn = jnp.dot(x, wi_ref[l], preferred_element_type=jnp.float32) + bi_ref[l]
        # TODO(synk): PyTorch nn.GELU() default is the exact erf form; tanh approx
        # kept (small systematic drift) to avoid relying on erf lowering in Mosaic.
        ffn = jax.nn.gelu(ffn, approximate=True)
        ffn = jnp.dot(ffn, wout_ref[l], preferred_element_type=jnp.float32) + bout_ref[l]
        x = layernorm(ffn + x, g2_ref[l], b2_ref[l])

    # --- CLS-token pooling + classifier head epilogue (single strided pick) ---
    pooled = x.reshape(batch, seq, HIDDEN)[:, 0, :]                 # (B, H)
    h1 = jnp.dot(pooled, wc1_ref[...], preferred_element_type=jnp.float32) + bc1_ref[...]
    h1 = jnp.maximum(h1, 0.0)
    # nn.Dropout(0.1) is identity at inference (eval) time.
    logits = jnp.dot(h1, wc2_ref[...], preferred_element_type=jnp.float32) + bc2_ref[...]
    o_ref[...] = logits.astype(o_ref.dtype)


# ------------------------------ parameter init --------------------------------
def init_params(key):
    def nrm(k, shape, std=0.02):
        return std * jax.random.normal(k, shape, dtype=jnp.float32)

    keys = iter(jax.random.split(key, 64))
    L, H, I, NH, HD = NUM_LAYERS, HIDDEN, INTERMEDIATE, NUM_HEADS, HEAD_DIM
    params = {
        "word_emb": nrm(next(keys), (VOCAB_SIZE, H)),
        "pos_emb": nrm(next(keys), (MAX_POS, H)),
        "type_emb": nrm(next(keys), (TYPE_VOCAB, H)),
        "emb_ln_g": jnp.ones((1, H), jnp.float32),
        "emb_ln_b": jnp.zeros((1, H), jnp.float32),
        # Attention weights stored as per-head blocks (equivalent partition of the
        # (H,H) Q/K/V/O matrices) so the kernel never slices the lane dimension.
        "wq": nrm(next(keys), (L, NH, H, HD)),
        "bq": jnp.zeros((L, NH, 1, HD), jnp.float32),
        "wk": nrm(next(keys), (L, NH, H, HD)),
        "bk": jnp.zeros((L, NH, 1, HD), jnp.float32),
        "wv": nrm(next(keys), (L, NH, H, HD)),
        "bv": jnp.zeros((L, NH, 1, HD), jnp.float32),
        "wo": nrm(next(keys), (L, NH, HD, H)),     # row-blocks of the output proj
        "bo": jnp.zeros((L, 1, H), jnp.float32),
        "ln1_g": jnp.ones((L, 1, H), jnp.float32),
        "ln1_b": jnp.zeros((L, 1, H), jnp.float32),
        "w_in": nrm(next(keys), (L, H, I)),
        "b_in": jnp.zeros((L, 1, I), jnp.float32),
        "w_out": nrm(next(keys), (L, I, H)),
        "b_out": jnp.zeros((L, 1, H), jnp.float32),
        "ln2_g": jnp.ones((L, 1, H), jnp.float32),
        "ln2_b": jnp.zeros((L, 1, H), jnp.float32),
        # classifier head: Linear(H, 512) -> ReLU -> Dropout -> Linear(512, 5)
        "wc1": nrm(next(keys), (H, CLS_HIDDEN)),
        "bc1": jnp.zeros((1, CLS_HIDDEN), jnp.float32),
        "wc2": nrm(next(keys), (CLS_HIDDEN, NUM_CLASSES)),
        "bc2": jnp.zeros((1, NUM_CLASSES), jnp.float32),
    }
    return params


# ------------------------------- forward pass ----------------------------------
def bert_text_classification(params, input_ids, attention_mask, token_type_ids=None):
    B, S = input_ids.shape
    if token_type_ids is None:
        token_type_ids = jnp.zeros_like(input_ids)

    # Only trivial dtype/shape plumbing stays in the wrapper; all compute
    # (embeddings, encoder, pooling, classifier) runs in the single Pallas call.
    ids = input_ids.astype(jnp.int32).reshape(B * S, 1)
    tt = token_type_ids.astype(jnp.int32).reshape(B * S, 1)
    mask3 = attention_mask.astype(jnp.float32).reshape(B, 1, S)

    kernel = functools.partial(_bert_fused_kernel, batch=B, seq=S)
    logits = pl.pallas_call(
        kernel,
        out_shape=jax.ShapeDtypeStruct((B, NUM_CLASSES), jnp.float32),
        in_specs=[_vmem()] * 28,
        out_specs=_vmem(),
    )(ids, tt, mask3,
      params["word_emb"], params["pos_emb"], params["type_emb"],
      params["emb_ln_g"], params["emb_ln_b"],
      params["wq"], params["bq"], params["wk"], params["bk"],
      params["wv"], params["bv"], params["wo"], params["bo"],
      params["ln1_g"], params["ln1_b"],
      params["w_in"], params["b_in"], params["w_out"], params["b_out"],
      params["ln2_g"], params["ln2_b"],
      params["wc1"], params["bc1"], params["wc2"], params["bc2"])
    return logits


# ----------------------------------- main --------------------------------------
if __name__ == "__main__":
    key = jax.random.PRNGKey(0)
    k_param, k_ids = jax.random.split(key)

    B, S = 2, 8
    params = init_params(k_param)
    input_ids = jax.random.randint(k_ids, (B, S), 0, VOCAB_SIZE, dtype=jnp.int32)
    attention_mask = jnp.array([[1, 1, 1, 1, 1, 1, 1, 1],
                                [1, 1, 1, 1, 1, 0, 0, 0]], dtype=jnp.int32)

    fwd = jax.jit(bert_text_classification)
    logits = fwd(params, input_ids, attention_mask)
    jax.block_until_ready(logits)
    assert logits.shape == (B, NUM_CLASSES) and logits.dtype == jnp.float32
    print("KERNEL_OK")
</pallas_src>

<mosaic_0001>
module attributes {stable_mosaic.version = 11 : i64} {
  func.func @_bert_fused_kernel(%arg0: memref<16x1xi32, #tpu.memory_space<vmem>>, %arg1: memref<16x1xi32, #tpu.memory_space<vmem>>, %arg2: memref<2x1x8xf32, #tpu.memory_space<vmem>>, %arg3: memref<100x32xf32, #tpu.memory_space<vmem>>, %arg4: memref<16x32xf32, #tpu.memory_space<vmem>>, %arg5: memref<2x32xf32, #tpu.memory_space<vmem>>, %arg6: memref<1x32xf32, #tpu.memory_space<vmem>>, %arg7: memref<1x32xf32, #tpu.memory_space<vmem>>, %arg8: memref<2x2x32x16xf32, #tpu.memory_space<vmem>>, %arg9: memref<2x2x1x16xf32, #tpu.memory_space<vmem>>, %arg10: memref<2x2x32x16xf32, #tpu.memory_space<vmem>>, %arg11: memref<2x2x1x16xf32, #tpu.memory_space<vmem>>, %arg12: memref<2x2x32x16xf32, #tpu.memory_space<vmem>>, %arg13: memref<2x2x1x16xf32, #tpu.memory_space<vmem>>, %arg14: memref<2x2x16x32xf32, #tpu.memory_space<vmem>>, %arg15: memref<2x1x32xf32, #tpu.memory_space<vmem>>, %arg16: memref<2x1x32xf32, #tpu.memory_space<vmem>>, %arg17: memref<2x1x32xf32, #tpu.memory_space<vmem>>, %arg18: memref<2x32x64xf32, #tpu.memory_space<vmem>>, %arg19: memref<2x1x64xf32, #tpu.memory_space<vmem>>, %arg20: memref<2x64x32xf32, #tpu.memory_space<vmem>>, %arg21: memref<2x1x32xf32, #tpu.memory_space<vmem>>, %arg22: memref<2x1x32xf32, #tpu.memory_space<vmem>>, %arg23: memref<2x1x32xf32, #tpu.memory_space<vmem>>, %arg24: memref<32x512xf32, #tpu.memory_space<vmem>>, %arg25: memref<1x512xf32, #tpu.memory_space<vmem>>, %arg26: memref<512x5xf32, #tpu.memory_space<vmem>>, %arg27: memref<1x5xf32, #tpu.memory_space<vmem>>, %arg28: memref<2x5xf32, #tpu.memory_space<vmem>>) attributes {dimension_semantics = [], scalar_prefetch = 0 : i64, scratch_operands = 0 : i64, tpu.core_type = #tpu.core_type<tc>} {
    %c0 = arith.constant 0 : index
    %c0_0 = arith.constant 0 : index
    %0 = vector.load %arg0[%c0, %c0_0] : memref<16x1xi32, #tpu.memory_space<vmem>>, vector<16x1xi32>
    %c0_1 = arith.constant 0 : index
    %c0_2 = arith.constant 0 : index
    %1 = vector.load %arg1[%c0_1, %c0_2] : memref<16x1xi32, #tpu.memory_space<vmem>>, vector<16x1xi32>
    %2 = tpu.iota {dimensions = array<i32: 1>} : vector<16x100xi32>
    %3 = vector.broadcast %0 : vector<16x1xi32> to vector<16x100xi32>
    %4 = arith.cmpi eq, %3, %2 : vector<16x100xi32>
    %cst = arith.constant 1.000000e+00 : f32
    %cst_3 = arith.constant 0.000000e+00 : f32
    %5 = vector.broadcast %cst : f32 to vector<16x100xf32>
    %6 = vector.broadcast %cst_3 : f32 to vector<16x100xf32>
    %7 = arith.select %4, %5, %6 : vector<16x100xi1>, vector<16x100xf32>
    %8 = tpu.iota {dimensions = array<i32: 1>} : vector<16x2xi32>
    %9 = vector.broadcast %1 : vector<16x1xi32> to vector<16x2xi32>
    %10 = arith.cmpi eq, %9, %8 : vector<16x2xi32>
    %cst_4 = arith.constant 1.000000e+00 : f32
    %cst_5 = arith.constant 0.000000e+00 : f32
    %11 = vector.broadcast %cst_4 : f32 to vector<16x2xf32>
    %12 = vector.broadcast %cst_5 : f32 to vector<16x2xf32>
    %13 = arith.select %10, %11, %12 : vector<16x2xi1>, vector<16x2xf32>
    %c0_6 = arith.constant 0 : index
    %c0_7 = arith.constant 0 : index
    %14 = vector.load %arg3[%c0_6, %c0_7] : memref<100x32xf32, #tpu.memory_space<vmem>>, vector<100x32xf32>
    %cst_8 = arith.constant dense<0.000000e+00> : vector<16x32xf32>
    %15 = tpu.matmul %7, %14, %cst_8 {dimension_numbers = #tpu.dot_dimension_numbers<[1], [0], [0], [1], [0, 0, 1, 1], [], []>} : vector<16x100xf32>, vector<100x32xf32>, vector<16x32xf32> -> vector<16x32xf32>
    %c0_9 = arith.constant 0 : index
    %c0_10 = arith.constant 0 : index
    %16 = vector.load %arg5[%c0_9, %c0_10] : memref<2x32xf32, #tpu.memory_space<vmem>>, vector<2x32xf32>
    %cst_11 = arith.constant dense<0.000000e+00> : vector<16x32xf32>
    %17 = tpu.matmul %13, %16, %cst_11 {dimension_numbers = #tpu.dot_dimension_numbers<[1], [0], [0], [1], [0, 0, 1, 1], [], []>} : vector<16x2xf32>, vector<2x32xf32>, vector<16x32xf32> -> vector<16x32xf32>
    %18 = arith.addf %15, %17 : vector<16x32xf32>
    %c0_12 = arith.constant 0 : index
    %c0_13 = arith.constant 0 : index
    %19 = vector.load %arg4[%c0_12, %c0_13] : memref<16x32xf32, #tpu.memory_space<vmem>>, vector<8x32xf32>
    %20 = vector.shape_cast %19 : vector<8x32xf32> to vector<1x8x32xf32>
    %21 = vector.shape_cast %20 : vector<1x8x32xf32> to vector<1x8x32xf32>
    %22 = vector.broadcast %21 : vector<1x8x32xf32> to vector<2x8x32xf32>
    %23 = vector.shape_cast %22 : vector<2x8x32xf32> to vector<16x32xf32>
    %24 = arith.addf %18, %23 : vector<16x32xf32>
    %c0_14 = arith.constant 0 : index
    %c0_15 = arith.constant 0 : index
    %25 = vector.load %arg6[%c0_14, %c0_15] : memref<1x32xf32, #tpu.memory_space<vmem>>, vector<1x32xf32>
    %c0_16 = arith.constant 0 : index
    %c0_17 = arith.constant 0 : index
    %26 = vector.load %arg7[%c0_16, %c0_17] : memref<1x32xf32, #tpu.memory_space<vmem>>, vector<1x32xf32>
    %cst_18 = arith.constant dense<0.000000e+00> : vector<16xf32>
    %27 = vector.multi_reduction <add>, %24, %cst_18 [1] : vector<16x32xf32> to vector<16xf32>
    %28 = vector.shape_cast %27 : vector<16xf32> to vector<16x1xf32>
    %cst_19 = arith.constant 3.200000e+01 : f32
    %29 = vector.broadcast %cst_19 : f32 to vector<16x1xf32>
    %30 = arith.divf %28, %29 : vector<16x1xf32>
    %31 = vector.broadcast %30 : vector<16x1xf32> to vector<16x32xf32>
    %32 = arith.subf %24, %31 : vector<16x32xf32>
    %33 = arith.mulf %32, %32 : vector<16x32xf32>
    %cst_20 = arith.constant dense<0.000000e+00> : vector<16xf32>
    %34 = vector.multi_reduction <add>, %33, %cst_20 [1] : vector<16x32xf32> to vector<16xf32>
    %35 = vector.shape_cast %34 : vector<16xf32> to vector<16x1xf32>
    %cst_21 = arith.constant 3.200000e+01 : f32
    %36 = vector.broadcast %cst_21 : f32 to vector<16x1xf32>
    %37 = arith.divf %35, %36 : vector<16x1xf32>
    %38 = vector.broadcast %30 : vector<16x1xf32> to vector<16x32xf32>
    %39 = arith.subf %24, %38 : vector<16x32xf32>
    %cst_22 = arith.constant 9.99999996E-13 : f32
    %40 = vector.broadcast %cst_22 : f32 to vector<16x1xf32>
    %41 = arith.addf %37, %40 : vector<16x1xf32>
    %42 = math.rsqrt %41 : vector<16x1xf32>
    %43 = vector.broadcast %42 : vector<16x1xf32> to vector<16x32xf32>
    %44 = arith.mulf %39, %43 : vector<16x32xf32>
    %45 = vector.broadcast %25 : vector<1x32xf32> to vector<16x32xf32>
    %46 = arith.mulf %44, %45 : vector<16x32xf32>
    %47 = vector.broadcast %26 : vector<1x32xf32> to vector<16x32xf32>
    %48 = arith.addf %46, %47 : vector<16x32xf32>
    %c0_23 = arith.constant 0 : index
    %c0_24 = arith.constant 0 : index
    %c0_25 = arith.constant 0 : index
    %49 = vector.load %arg2[%c0_23, %c0_24, %c0_25] : memref<2x1x8xf32, #tpu.memory_space<vmem>>, vector<2x1x8xf32>
    %cst_26 = arith.constant 1.000000e+00 : f32
    %50 = vector.broadcast %cst_26 : f32 to vector<2x1x8xf32>
    %51 = arith.subf %50, %49 : vector<2x1x8xf32>
    %cst_27 = arith.constant -1.000000e+09 : f32
    %52 = vector.broadcast %cst_27 : f32 to vector<2x1x8xf32>
    %53 = arith.mulf %51, %52 : vector<2x1x8xf32>
    %c0_28 = arith.constant 0 : index
    %c0_29 = arith.constant 0 : index
    %c0_30 = arith.constant 0 : index
    %c0_31 = arith.constant 0 : index
    %54 = vector.load %arg8[%c0_28, %c0_29, %c0_30, %c0_31] : memref<2x2x32x16xf32, #tpu.memory_space<vmem>>, vector<1x1x32x16xf32>
    %55 = vector.shape_cast %54 : vector<1x1x32x16xf32> to vector<32x16xf32>
    %cst_32 = arith.constant dense<0.000000e+00> : vector<16x16xf32>
    %56 = tpu.matmul %48, %55, %cst_32 {dimension_numbers = #tpu.dot_dimension_numbers<[1], [0], [0], [1], [0, 0, 1, 1], [], []>} : vector<16x32xf32>, vector<32x16xf32>, vector<16x16xf32> -> vector<16x16xf32>
    %c0_33 = arith.constant 0 : index
    %c0_34 = arith.constant 0 : index
    %c0_35 = arith.constant 0 : index
    %c0_36 = arith.constant 0 : index
    %57 = vector.load %arg9[%c0_33, %c0_34, %c0_35, %c0_36] : memref<2x2x1x16xf32, #tpu.memory_space<vmem>>, vector<1x1x1x16xf32>
    %58 = vector.shape_cast %57 : vector<1x1x1x16xf32> to vector<1x16xf32>
    %59 = vector.broadcast %58 : vector<1x16xf32> to vector<16x16xf32>
    %60 = arith.addf %56, %59 : vector<16x16xf32>
    %c0_37 = arith.constant 0 : index
    %c0_38 = arith.constant 0 : index
    %c0_39 = arith.constant 0 : index
    %c0_40 = arith.constant 0 : index
    %61 = vector.load %arg10[%c0_37, %c0_38, %c0_39, %c0_40] : memref<2x2x32x16xf32, #tpu.memory_space<vmem>>, vector<1x1x32x16xf32>
    %62 = vector.shape_cast %61 : vector<1x1x32x16xf32> to vector<32x16xf32>
    %cst_41 = arith.constant dense<0.000000e+00> : vector<16x16xf32>
    %63 = tpu.matmul %48, %62, %cst_41 {dimension_numbers = #tpu.dot_dimension_numbers<[1], [0], [0], [1], [0, 0, 1, 1], [], []>} : vector<16x32xf32>, vector<32x16xf32>, vector<16x16xf32> -> vector<16x16xf32>
    %c0_42 = arith.constant 0 : index
    %c0_43 = arith.constant 0 : index
    %c0_44 = arith.constant 0 : index
    %c0_45 = arith.constant 0 : index
    %64 = vector.load %arg11[%c0_42, %c0_43, %c0_44, %c0_45] : memref<2x2x1x16xf32, #tpu.memory_space<vmem>>, vector<1x1x1x16xf32>
    %65 = vector.shape_cast %64 : vector<1x1x1x16xf32> to vector<1x16xf32>
    %66 = vector.broadcast %65 : vector<1x16xf32> to vector<16x16xf32>
    %67 = arith.addf %63, %66 : vector<16x16xf32>
    %c0_46 = arith.constant 0 : index
    %c0_47 = arith.constant 0 : index
    %c0_48 = arith.constant 0 : index
    %c0_49 = arith.constant 0 : index
    %68 = vector.load %arg12[%c0_46, %c0_47, %c0_48, %c0_49] : memref<2x2x32x16xf32, #tpu.memory_space<vmem>>, vector<1x1x32x16xf32>
    %69 = vector.shape_cast %68 : vector<1x1x32x16xf32> to vector<32x16xf32>
    %cst_50 = arith.constant dense<0.000000e+00> : vector<16x16xf32>
    %70 = tpu.matmul %48, %69, %cst_50 {dimension_numbers = #tpu.dot_dimension_numbers<[1], [0], [0], [1], [0, 0, 1, 1], [], []>} : vector<16x32xf32>, vector<32x16xf32>, vector<16x16xf32> -> vector<16x16xf32>
    %c0_51 = arith.constant 0 : index
    %c0_52 = arith.constant 0 : index
    %c0_53 = arith.constant 0 : index
    %c0_54 = arith.constant 0 : index
    %71 = vector.load %arg13[%c0_51, %c0_52, %c0_53, %c0_54] : memref<2x2x1x16xf32, #tpu.memory_space<vmem>>, vector<1x1x1x16xf32>
    %72 = vector.shape_cast %71 : vector<1x1x1x16xf32> to vector<1x16xf32>
    %73 = vector.broadcast %72 : vector<1x16xf32> to vector<16x16xf32>
    %74 = arith.addf %70, %73 : vector<16x16xf32>
    %75 = vector.shape_cast %60 : vector<16x16xf32> to vector<2x8x16xf32>
    %76 = vector.shape_cast %67 : vector<16x16xf32> to vector<2x8x16xf32>
    %77 = vector.shape_cast %74 : vector<16x16xf32> to vector<2x8x16xf32>
    "tpu.trace_start"() <{level = 10 : i32, message = "bqd,bkd->bqk"}> : () -> ()
    %cst_55 = arith.constant dense<0.000000e+00> : vector<2x8x8xf32>
    %78 = tpu.matmul %75, %76, %cst_55 {dimension_numbers = #tpu.dot_dimension_numbers<[2], [2], [1], [1], [0, 0, 0, 1, 1, 1], [0], [0]>} : vector<2x8x16xf32>, vector<2x8x16xf32>, vector<2x8x8xf32> -> vector<2x8x8xf32>
    "tpu.trace_stop"() : () -> ()
    %cst_56 = arith.constant 2.500000e-01 : f32
    %79 = vector.broadcast %cst_56 : f32 to vector<2x8x8xf32>
    %80 = arith.mulf %78, %79 : vector<2x8x8xf32>
    %81 = vector.broadcast %53 : vector<2x1x8xf32> to vector<2x8x8xf32>
    %82 = arith.addf %80, %81 : vector<2x8x8xf32>
    %cst_57 = arith.constant dense<0xFF800000> : vector<2x8xf32>
    %83 = vector.multi_reduction <maximumf>, %82, %cst_57 [2] : vector<2x8x8xf32> to vector<2x8xf32>
    %84 = vector.shape_cast %83 : vector<2x8xf32> to vector<2x8x1xf32>
    %85 = vector.broadcast %84 : vector<2x8x1xf32> to vector<2x8x8xf32>
    %86 = arith.subf %82, %85 : vector<2x8x8xf32>
    %87 = math.exp %86 : vector<2x8x8xf32>
    %cst_58 = arith.constant dense<0.000000e+00> : vector<2x8xf32>
    %88 = vector.multi_reduction <add>, %87, %cst_58 [2] : vector<2x8x8xf32> to vector<2x8xf32>
    %89 = vector.shape_cast %88 : vector<2x8xf32> to vector<2x8x1xf32>
    %90 = vector.broadcast %89 : vector<2x8x1xf32> to vector<2x8x8xf32>
    %91 = arith.divf %87, %90 : vector<2x8x8xf32>
    "tpu.trace_start"() <{level = 10 : i32, message = "bqk,bkd->bqd"}> : () -> ()
    %cst_59 = arith.constant dense<0.000000e+00> : vector<2x8x16xf32>
    %92 = tpu.matmul %91, %77, %cst_59 {dimension_numbers = #tpu.dot_dimension_numbers<[2], [1], [1], [2], [0, 0, 0, 1, 1, 2], [0], [0]>} : vector<2x8x8xf32>, vector<2x8x16xf32>, vector<2x8x16xf32> -> vector<2x8x16xf32>
    "tpu.trace_stop"() : () -> ()
    %93 = vector.shape_cast %92 : vector<2x8x16xf32> to vector<16x16xf32>
    %c0_60 = arith.constant 0 : index
    %c0_61 = arith.constant 0 : index
    %c0_62 = arith.constant 0 : index
    %c0_63 = arith.constant 0 : index
    %94 = vector.load %arg14[%c0_60, %c0_61, %c0_62, %c0_63] : memref<2x2x16x32xf32, #tpu.memory_space<vmem>>, vector<1x1x16x32xf32>
    %95 = vector.shape_cast %94 : vector<1x1x16x32xf32> to vector<16x32xf32>
    %cst_64 = arith.constant dense<0.000000e+00> : vector<16x32xf32>
    %96 = tpu.matmul %93, %95, %cst_64 {dimension_numbers = #tpu.dot_dimension_numbers<[1], [0], [0], [1], [0, 0, 1, 1], [], []>} : vector<16x16xf32>, vector<16x32xf32>, vector<16x32xf32> -> vector<16x32xf32>
    %c0_65 = arith.constant 0 : index
    %c1 = arith.constant 1 : index
    %c0_66 = arith.constant 0 : index
    %c0_67 = arith.constant 0 : index
    %97 = vector.load %arg8[%c0_65, %c1, %c0_66, %c0_67] : memref<2x2x32x16xf32, #tpu.memory_space<vmem>>, vector<1x1x32x16xf32>
    %98 = vector.shape_cast %97 : vector<1x1x32x16xf32> to vector<32x16xf32>
    %cst_68 = arith.constant dense<0.000000e+00> : vector<16x16xf32>
    %99 = tpu.matmul %48, %98, %cst_68 {dimension_numbers = #tpu.dot_dimension_numbers<[1], [0], [0], [1], [0, 0, 1, 1], [], []>} : vector<16x32xf32>, vector<32x16xf32>, vector<16x16xf32> -> vector<16x16xf32>
    %c0_69 = arith.constant 0 : index
    %c1_70 = arith.constant 1 : index
    %c0_71 = arith.constant 0 : index
    %c0_72 = arith.constant 0 : index
    %100 = vector.load %arg9[%c0_69, %c1_70, %c0_71, %c0_72] : memref<2x2x1x16xf32, #tpu.memory_space<vmem>>, vector<1x1x1x16xf32>
    %101 = vector.shape_cast %100 : vector<1x1x1x16xf32> to vector<1x16xf32>
    %102 = vector.broadcast %101 : vector<1x16xf32> to vector<16x16xf32>
    %103 = arith.addf %99, %102 : vector<16x16xf32>
    %c0_73 = arith.constant 0 : index
    %c1_74 = arith.constant 1 : index
    %c0_75 = arith.constant 0 : index
    %c0_76 = arith.constant 0 : index
    %104 = vector.load %arg10[%c0_73, %c1_74, %c0_75, %c0_76] : memref<2x2x32x16xf32, #tpu.memory_space<vmem>>, vector<1x1x32x16xf32>
    %105 = vector.shape_cast %104 : vector<1x1x32x16xf32> to vector<32x16xf32>
    %cst_77 = arith.constant dense<0.000000e+00> : vector<16x16xf32>
    %106 = tpu.matmul %48, %105, %cst_77 {dimension_numbers = #tpu.dot_dimension_numbers<[1], [0], [0], [1], [0, 0, 1, 1], [], []>} : vector<16x32xf32>, vector<32x16xf32>, vector<16x16xf32> -> vector<16x16xf32>
    %c0_78 = arith.constant 0 : index
    %c1_79 = arith.constant 1 : index
    %c0_80 = arith.constant 0 : index
    %c0_81 = arith.constant 0 : index
    %107 = vector.load %arg11[%c0_78, %c1_79, %c0_80, %c0_81] : memref<2x2x1x16xf32, #tpu.memory_space<vmem>>, vector<1x1x1x16xf32>
    %108 = vector.shape_cast %107 : vector<1x1x1x16xf32> to vector<1x16xf32>
    %109 = vector.broadcast %108 : vector<1x16xf32> to vector<16x16xf32>
    %110 = arith.addf %106, %109 : vector<16x16xf32>
    %c0_82 = arith.constant 0 : index
    %c1_83 = arith.constant 1 : index
    %c0_84 = arith.constant 0 : index
    %c0_85 = arith.constant 0 : index
    %111 = vector.load %arg12[%c0_82, %c1_83, %c0_84, %c0_85] : memref<2x2x32x16xf32, #tpu.memory_space<vmem>>, vector<1x1x32x16xf32>
    %112 = vector.shape_cast %111 : vector<1x1x32x16xf32> to vector<32x16xf32>
    %cst_86 = arith.constant dense<0.000000e+00> : vector<16x16xf32>
    %113 = tpu.matmul %48, %112, %cst_86 {dimension_numbers = #tpu.dot_dimension_numbers<[1], [0], [0], [1], [0, 0, 1, 1], [], []>} : vector<16x32xf32>, vector<32x16xf32>, vector<16x16xf32> -> vector<16x16xf32>
    %c0_87 = arith.constant 0 : index
    %c1_88 = arith.constant 1 : index
    %c0_89 = arith.constant 0 : index
    %c0_90 = arith.constant 0 : index
    %114 = vector.load %arg13[%c0_87, %c1_88, %c0_89, %c0_90] : memref<2x2x1x16xf32, #tpu.memory_space<vmem>>, vector<1x1x1x16xf32>
    %115 = vector.shape_cast %114 : vector<1x1x1x16xf32> to vector<1x16xf32>
    %116 = vector.broadcast %115 : vector<1x16xf32> to vector<16x16xf32>
    %117 = arith.addf %113, %116 : vector<16x16xf32>
    %118 = vector.shape_cast %103 : vector<16x16xf32> to vector<2x8x16xf32>
    %119 = vector.shape_cast %110 : vector<16x16xf32> to vector<2x8x16xf32>
    %120 = vector.shape_cast %117 : vector<16x16xf32> to vector<2x8x16xf32>
    "tpu.trace_start"() <{level = 10 : i32, message = "bqd,bkd->bqk"}> : () -> ()
    %cst_91 = arith.constant dense<0.000000e+00> : vector<2x8x8xf32>
    %121 = tpu.matmul %118, %119, %cst_91 {dimension_numbers = #tpu.dot_dimension_numbers<[2], [2], [1], [1], [0, 0, 0, 1, 1, 1], [0], [0]>} : vector<2x8x16xf32>, vector<2x8x16xf32>, vector<2x8x8xf32> -> vector<2x8x8xf32>
    "tpu.trace_stop"() : () -> ()
    %cst_92 = arith.constant 2.500000e-01 : f32
    %122 = vector.broadcast %cst_92 : f32 to vector<2x8x8xf32>
    %123 = arith.mulf %121, %122 : vector<2x8x8xf32>
    %124 = vector.broadcast %53 : vector<2x1x8xf32> to vector<2x8x8xf32>
    %125 = arith.addf %123, %124 : vector<2x8x8xf32>
    %cst_93 = arith.constant dense<0xFF800000> : vector<2x8xf32>
    %126 = vector.multi_reduction <maximumf>, %125, %cst_93 [2] : vector<2x8x8xf32> to vector<2x8xf32>
    %127 = vector.shape_cast %126 : vector<2x8xf32> to vector<2x8x1xf32>
    %128 = vector.broadcast %127 : vector<2x8x1xf32> to vector<2x8x8xf32>
    %129 = arith.subf %125, %128 : vector<2x8x8xf32>
    %130 = math.exp %129 : vector<2x8x8xf32>
    %cst_94 = arith.constant dense<0.000000e+00> : vector<2x8xf32>
    %131 = vector.multi_reduction <add>, %130, %cst_94 [2] : vector<2x8x8xf32> to vector<2x8xf32>
    %132 = vector.shape_cast %131 : vector<2x8xf32> to vector<2x8x1xf32>
    %133 = vector.broadcast %132 : vector<2x8x1xf32> to vector<2x8x8xf32>
    %134 = arith.divf %130, %133 : vector<2x8x8xf32>
    "tpu.trace_start"() <{level = 10 : i32, message = "bqk,bkd->bqd"}> : () -> ()
    %cst_95 = arith.constant dense<0.000000e+00> : vector<2x8x16xf32>
    %135 = tpu.matmul %134, %120, %cst_95 {dimension_numbers = #tpu.dot_dimension_numbers<[2], [1], [1], [2], [0, 0, 0, 1, 1, 2], [0], [0]>} : vector<2x8x8xf32>, vector<2x8x16xf32>, vector<2x8x16xf32> -> vector<2x8x16xf32>
    "tpu.trace_stop"() : () -> ()
    %136 = vector.shape_cast %135 : vector<2x8x16xf32> to vector<16x16xf32>
    %c0_96 = arith.constant 0 : index
    %c1_97 = arith.constant 1 : index
    %c0_98 = arith.constant 0 : index
    %c0_99 = arith.constant 0 : index
    %137 = vector.load %arg14[%c0_96, %c1_97, %c0_98, %c0_99] : memref<2x2x16x32xf32, #tpu.memory_space<vmem>>, vector<1x1x16x32xf32>
    %138 = vector.shape_cast %137 : vector<1x1x16x32xf32> to vector<16x32xf32>
    %cst_100 = arith.constant dense<0.000000e+00> : vector<16x32xf32>
    %139 = tpu.matmul %136, %138, %cst_100 {dimension_numbers = #tpu.dot_dimension_numbers<[1], [0], [0], [1], [0, 0, 1, 1], [], []>} : vector<16x16xf32>, vector<16x32xf32>, vector<16x32xf32> -> vector<16x32xf32>
    %140 = arith.addf %96, %139 : vector<16x32xf32>
    %c0_101 = arith.constant 0 : index
    %c0_102 = arith.constant 0 : index
    %c0_103 = arith.constant 0 : index
    %141 = vector.load %arg15[%c0_101, %c0_102, %c0_103] : memref<2x1x32xf32, #tpu.memory_space<vmem>>, vector<1x1x32xf32>
    %142 = vector.shape_cast %141 : vector<1x1x32xf32> to vector<1x32xf32>
    %143 = vector.broadcast %142 : vector<1x32xf32> to vector<16x32xf32>
    %144 = arith.addf %140, %143 : vector<16x32xf32>
    %145 = arith.addf %144, %48 : vector<16x32xf32>
    %c0_104 = arith.constant 0 : index
    %c0_105 = arith.constant 0 : index
    %c0_106 = arith.constant 0 : index
    %146 = vector.load %arg16[%c0_104, %c0_105, %c0_106] : memref<2x1x32xf32, #tpu.memory_space<vmem>>, vector<1x1x32xf32>
    %147 = vector.shape_cast %146 : vector<1x1x32xf32> to vector<1x32xf32>
    %c0_107 = arith.constant 0 : index
    %c0_108 = arith.constant 0 : index
    %c0_109 = arith.constant 0 : index
    %148 = vector.load %arg17[%c0_107, %c0_108, %c0_109] : memref<2x1x32xf32, #tpu.memory_space<vmem>>, vector<1x1x32xf32>
    %149 = vector.shape_cast %148 : vector<1x1x32xf32> to vector<1x32xf32>
    %cst_110 = arith.constant dense<0.000000e+00> : vector<16xf32>
    %150 = vector.multi_reduction <add>, %145, %cst_110 [1] : vector<16x32xf32> to vector<16xf32>
    %151 = vector.shape_cast %150 : vector<16xf32> to vector<16x1xf32>
    %cst_111 = arith.constant 3.200000e+01 : f32
    %152 = vector.broadcast %cst_111 : f32 to vector<16x1xf32>
    %153 = arith.divf %151, %152 : vector<16x1xf32>
    %154 = vector.broadcast %153 : vector<16x1xf32> to vector<16x32xf32>
    %155 = arith.subf %145, %154 : vector<16x32xf32>
    %156 = arith.mulf %155, %155 : vector<16x32xf32>
    %cst_112 = arith.constant dense<0.000000e+00> : vector<16xf32>
    %157 = vector.multi_reduction <add>, %156, %cst_112 [1] : vector<16x32xf32> to vector<16xf32>
    %158 = vector.shape_cast %157 : vector<16xf32> to vector<16x1xf32>
    %cst_113 = arith.constant 3.200000e+01 : f32
    %159 = vector.broadcast %cst_113 : f32 to vector<16x1xf32>
    %160 = arith.divf %158, %159 : vector<16x1xf32>
    %161 = vector.broadcast %153 : vector<16x1xf32> to vector<16x32xf32>
    %162 = arith.subf %145, %161 : vector<16x32xf32>
    %cst_114 = arith.constant 9.99999996E-13 : f32
    %163 = vector.broadcast %cst_114 : f32 to vector<16x1xf32>
    %164 = arith.addf %160, %163 : vector<16x1xf32>
    %165 = math.rsqrt %164 : vector<16x1xf32>
    %166 = vector.broadcast %165 : vector<16x1xf32> to vector<16x32xf32>
    %167 = arith.mulf %162, %166 : vector<16x32xf32>
    %168 = vector.broadcast %147 : vector<1x32xf32> to vector<16x32xf32>
    %169 = arith.mulf %167, %168 : vector<16x32xf32>
    %170 = vector.broadcast %149 : vector<1x32xf32> to vector<16x32xf32>
    %171 = arith.addf %169, %170 : vector<16x32xf32>
    %c0_115 = arith.constant 0 : index
    %c0_116 = arith.constant 0 : index
    %c0_117 = arith.constant 0 : index
    %172 = vector.load %arg18[%c0_115, %c0_116, %c0_117] : memref<2x32x64xf32, #tpu.memory_space<vmem>>, vector<1x32x64xf32>
    %173 = vector.shape_cast %172 : vector<1x32x64xf32> to vector<32x64xf32>
    %cst_118 = arith.constant dense<0.000000e+00> : vector<16x64xf32>
    %174 = tpu.matmul %171, %173, %cst_118 {dimension_numbers = #tpu.dot_dimension_numbers<[1], [0], [0], [1], [0, 0, 1, 1], [], []>} : vector<16x32xf32>, vector<32x64xf32>, vector<16x64xf32> -> vector<16x64xf32>
    %c0_119 = arith.constant 0 : index
    %c0_120 = arith.constant 0 : index
    %c0_121 = arith.constant 0 : index
    %175 = vector.load %arg19[%c0_119, %c0_120, %c0_121] : memref<2x1x64xf32, #tpu.memory_space<vmem>>, vector<1x1x64xf32>
    %176 = vector.shape_cast %175 : vector<1x1x64xf32> to vector<1x64xf32>
    %177 = vector.broadcast %176 : vector<1x64xf32> to vector<16x64xf32>
    %178 = arith.addf %174, %177 : vector<16x64xf32>
    %179 = arith.mulf %178, %178 : vector<16x64xf32>
    %180 = arith.mulf %178, %179 : vector<16x64xf32>
    %cst_122 = arith.constant 4.471500e-02 : f32
    %181 = vector.broadcast %cst_122 : f32 to vector<16x64xf32>
    %182 = arith.mulf %181, %180 : vector<16x64xf32>
    %183 = arith.addf %178, %182 : vector<16x64xf32>
    %cst_123 = arith.constant 0.797884583 : f32
    %184 = vector.broadcast %cst_123 : f32 to vector<16x64xf32>
    %185 = arith.mulf %184, %183 : vector<16x64xf32>
    %186 = math.tanh %185 : vector<16x64xf32>
    %cst_124 = arith.constant 1.000000e+00 : f32
    %187 = vector.broadcast %cst_124 : f32 to vector<16x64xf32>
    %188 = arith.addf %187, %186 : vector<16x64xf32>
    %cst_125 = arith.constant 5.000000e-01 : f32
    %189 = vector.broadcast %cst_125 : f32 to vector<16x64xf32>
    %190 = arith.mulf %189, %188 : vector<16x64xf32>
    %191 = arith.mulf %178, %190 : vector<16x64xf32>
    %c0_126 = arith.constant 0 : index
    %c0_127 = arith.constant 0 : index
    %c0_128 = arith.constant 0 : index
    %192 = vector.load %arg20[%c0_126, %c0_127, %c0_128] : memref<2x64x32xf32, #tpu.memory_space<vmem>>, vector<1x64x32xf32>
    %193 = vector.shape_cast %192 : vector<1x64x32xf32> to vector<64x32xf32>
    %cst_129 = arith.constant dense<0.000000e+00> : vector<16x32xf32>
    %194 = tpu.matmul %191, %193, %cst_129 {dimension_numbers = #tpu.dot_dimension_numbers<[1], [0], [0], [1], [0, 0, 1, 1], [], []>} : vector<16x64xf32>, vector<64x32xf32>, vector<16x32xf32> -> vector<16x32xf32>
    %c0_130 = arith.constant 0 : index
    %c0_131 = arith.constant 0 : index
    %c0_132 = arith.constant 0 : index
    %195 = vector.load %arg21[%c0_130, %c0_131, %c0_132] : memref<2x1x32xf32, #tpu.memory_space<vmem>>, vector<1x1x32xf32>
    %196 = vector.shape_cast %195 : vector<1x1x32xf32> to vector<1x32xf32>
    %197 = vector.broadcast %196 : vector<1x32xf32> to vector<16x32xf32>
    %198 = arith.addf %194, %197 : vector<16x32xf32>
    %199 = arith.addf %198, %171 : vector<16x32xf32>
    %c0_133 = arith.constant 0 : index
    %c0_134 = arith.constant 0 : index
    %c0_135 = arith.constant 0 : index
    %200 = vector.load %arg22[%c0_133, %c0_134, %c0_135] : memref<2x1x32xf32, #tpu.memory_space<vmem>>, vector<1x1x32xf32>
    %201 = vector.shape_cast %200 : vector<1x1x32xf32> to vector<1x32xf32>
    %c0_136 = arith.constant 0 : index
    %c0_137 = arith.constant 0 : index
    %c0_138 = arith.constant 0 : index
    %202 = vector.load %arg23[%c0_136, %c0_137, %c0_138] : memref<2x1x32xf32, #tpu.memory_space<vmem>>, vector<1x1x32xf32>
    %203 = vector.shape_cast %202 : vector<1x1x32xf32> to vector<1x32xf32>
    %cst_139 = arith.constant dense<0.000000e+00> : vector<16xf32>
    %204 = vector.multi_reduction <add>, %199, %cst_139 [1] : vector<16x32xf32> to vector<16xf32>
    %205 = vector.shape_cast %204 : vector<16xf32> to vector<16x1xf32>
    %cst_140 = arith.constant 3.200000e+01 : f32
    %206 = vector.broadcast %cst_140 : f32 to vector<16x1xf32>
    %207 = arith.divf %205, %206 : vector<16x1xf32>
    %208 = vector.broadcast %207 : vector<16x1xf32> to vector<16x32xf32>
    %209 = arith.subf %199, %208 : vector<16x32xf32>
    %210 = arith.mulf %209, %209 : vector<16x32xf32>
    %cst_141 = arith.constant dense<0.000000e+00> : vector<16xf32>
    %211 = vector.multi_reduction <add>, %210, %cst_141 [1] : vector<16x32xf32> to vector<16xf32>
    %212 = vector.shape_cast %211 : vector<16xf32> to vector<16x1xf32>
    %cst_142 = arith.constant 3.200000e+01 : f32
    %213 = vector.broadcast %cst_142 : f32 to vector<16x1xf32>
    %214 = arith.divf %212, %213 : vector<16x1xf32>
    %215 = vector.broadcast %207 : vector<16x1xf32> to vector<16x32xf32>
    %216 = arith.subf %199, %215 : vector<16x32xf32>
    %cst_143 = arith.constant 9.99999996E-13 : f32
    %217 = vector.broadcast %cst_143 : f32 to vector<16x1xf32>
    %218 = arith.addf %214, %217 : vector<16x1xf32>
    %219 = math.rsqrt %218 : vector<16x1xf32>
    %220 = vector.broadcast %219 : vector<16x1xf32> to vector<16x32xf32>
    %221 = arith.mulf %216, %220 : vector<16x32xf32>
    %222 = vector.broadcast %201 : vector<1x32xf32> to vector<16x32xf32>
    %223 = arith.mulf %221, %222 : vector<16x32xf32>
    %224 = vector.broadcast %203 : vector<1x32xf32> to vector<16x32xf32>
    %225 = arith.addf %223, %224 : vector<16x32xf32>
    %c1_144 = arith.constant 1 : index
    %c0_145 = arith.constant 0 : index
    %c0_146 = arith.constant 0 : index
    %c0_147 = arith.constant 0 : index
    %226 = vector.load %arg8[%c1_144, %c0_145, %c0_146, %c0_147] : memref<2x2x32x16xf32, #tpu.memory_space<vmem>>, vector<1x1x32x16xf32>
    %227 = vector.shape_cast %226 : vector<1x1x32x16xf32> to vector<32x16xf32>
    %cst_148 = arith.constant dense<0.000000e+00> : vector<16x16xf32>
    %228 = tpu.matmul %225, %227, %cst_148 {dimension_numbers = #tpu.dot_dimension_numbers<[1], [0], [0], [1], [0, 0, 1, 1], [], []>} : vector<16x32xf32>, vector<32x16xf32>, vector<16x16xf32> -> vector<16x16xf32>
    %c1_149 = arith.constant 1 : index
    %c0_150 = arith.constant 0 : index
    %c0_151 = arith.constant 0 : index
    %c0_152 = arith.constant 0 : index
    %229 = vector.load %arg9[%c1_149, %c0_150, %c0_151, %c0_152] : memref<2x2x1x16xf32, #tpu.memory_space<vmem>>, vector<1x1x1x16xf32>
    %230 = vector.shape_cast %229 : vector<1x1x1x16xf32> to vector<1x16xf32>
    %231 = vector.broadcast %230 : vector<1x16xf32> to vector<16x16xf32>
    %232 = arith.addf %228, %231 : vector<16x16xf32>
    %c1_153 = arith.constant 1 : index
    %c0_154 = arith.constant 0 : index
    %c0_155 = arith.constant 0 : index
    %c0_156 = arith.constant 0 : index
    %233 = vector.load %arg10[%c1_153, %c0_154, %c0_155, %c0_156] : memref<2x2x32x16xf32, #tpu.memory_space<vmem>>, vector<1x1x32x16xf32>
    %234 = vector.shape_cast %233 : vector<1x1x32x16xf32> to vector<32x16xf32>
    %cst_157 = arith.constant dense<0.000000e+00> : vector<16x16xf32>
    %235 = tpu.matmul %225, %234, %cst_157 {dimension_numbers = #tpu.dot_dimension_numbers<[1], [0], [0], [1], [0, 0, 1, 1], [], []>} : vector<16x32xf32>, vector<32x16xf32>, vector<16x16xf32> -> vector<16x16xf32>
    %c1_158 = arith.constant 1 : index
    %c0_159 = arith.constant 0 : index
    %c0_160 = arith.constant 0 : index
    %c0_161 = arith.constant 0 : index
    %236 = vector.load %arg11[%c1_158, %c0_159, %c0_160, %c0_161] : memref<2x2x1x16xf32, #tpu.memory_space<vmem>>, vector<1x1x1x16xf32>
    %237 = vector.shape_cast %236 : vector<1x1x1x16xf32> to vector<1x16xf32>
    %238 = vector.broadcast %237 : vector<1x16xf32> to vector<16x16xf32>
    %239 = arith.addf %235, %238 : vector<16x16xf32>
    %c1_162 = arith.constant 1 : index
    %c0_163 = arith.constant 0 : index
    %c0_164 = arith.constant 0 : index
    %c0_165 = arith.constant 0 : index
    %240 = vector.load %arg12[%c1_162, %c0_163, %c0_164, %c0_165] : memref<2x2x32x16xf32, #tpu.memory_space<vmem>>, vector<1x1x32x16xf32>
    %241 = vector.shape_cast %240 : vector<1x1x32x16xf32> to vector<32x16xf32>
    %cst_166 = arith.constant dense<0.000000e+00> : vector<16x16xf32>
    %242 = tpu.matmul %225, %241, %cst_166 {dimension_numbers = #tpu.dot_dimension_numbers<[1], [0], [0], [1], [0, 0, 1, 1], [], []>} : vector<16x32xf32>, vector<32x16xf32>, vector<16x16xf32> -> vector<16x16xf32>
    %c1_167 = arith.constant 1 : index
    %c0_168 = arith.constant 0 : index
    %c0_169 = arith.constant 0 : index
    %c0_170 = arith.constant 0 : index
    %243 = vector.load %arg13[%c1_167, %c0_168, %c0_169, %c0_170] : memref<2x2x1x16xf32, #tpu.memory_space<vmem>>, vector<1x1x1x16xf32>
    %244 = vector.shape_cast %243 : vector<1x1x1x16xf32> to vector<1x16xf32>
    %245 = vector.broadcast %244 : vector<1x16xf32> to vector<16x16xf32>
    %246 = arith.addf %242, %245 : vector<16x16xf32>
    %247 = vector.shape_cast %232 : vector<16x16xf32> to vector<2x8x16xf32>
    %248 = vector.shape_cast %239 : vector<16x16xf32> to vector<2x8x16xf32>
    %249 = vector.shape_cast %246 : vector<16x16xf32> to vector<2x8x16xf32>
    "tpu.trace_start"() <{level = 10 : i32, message = "bqd,bkd->bqk"}> : () -> ()
    %cst_171 = arith.constant dense<0.000000e+00> : vector<2x8x8xf32>
    %250 = tpu.matmul %247, %248, %cst_171 {dimension_numbers = #tpu.dot_dimension_numbers<[2], [2], [1], [1], [0, 0, 0, 1, 1, 1], [0], [0]>} : vector<2x8x16xf32>, vector<2x8x16xf32>, vector<2x8x8xf32> -> vector<2x8x8xf32>
    "tpu.trace_stop"() : () -> ()
    %cst_172 = arith.constant 2.500000e-01 : f32
    %251 = vector.broadcast %cst_172 : f32 to vector<2x8x8xf32>
    %252 = arith.mulf %250, %251 : vector<2x8x8xf32>
    %253 = vector.broadcast %53 : vector<2x1x8xf32> to vector<2x8x8xf32>
    %254 = arith.addf %252, %253 : vector<2x8x8xf32>
    %cst_173 = arith.constant dense<0xFF800000> : vector<2x8xf32>
    %255 = vector.multi_reduction <maximumf>, %254, %cst_173 [2] : vector<2x8x8xf32> to vector<2x8xf32>
    %256 = vector.shape_cast %255 : vector<2x8xf32> to vector<2x8x1xf32>
    %257 = vector.broadcast %256 : vector<2x8x1xf32> to vector<2x8x8xf32>
    %258 = arith.subf %254, %257 : vector<2x8x8xf32>
    %259 = math.exp %258 : vector<2x8x8xf32>
    %cst_174 = arith.constant dense<0.000000e+00> : vector<2x8xf32>
    %260 = vector.multi_reduction <add>, %259, %cst_174 [2] : vector<2x8x8xf32> to vector<2x8xf32>
    %261 = vector.shape_cast %260 : vector<2x8xf32> to vector<2x8x1xf32>
    %262 = vector.broadcast %261 : vector<2x8x1xf32> to vector<2x8x8xf32>
    %263 = arith.divf %259, %262 : vector<2x8x8xf32>
    "tpu.trace_start"() <{level = 10 : i32, message = "bqk,bkd->bqd"}> : () -> ()
    %cst_175 = arith.constant dense<0.000000e+00> : vector<2x8x16xf32>
    %264 = tpu.matmul %263, %249, %cst_175 {dimension_numbers = #tpu.dot_dimension_numbers<[2], [1], [1], [2], [0, 0, 0, 1, 1, 2], [0], [0]>} : vector<2x8x8xf32>, vector<2x8x16xf32>, vector<2x8x16xf32> -> vector<2x8x16xf32>
    "tpu.trace_stop"() : () -> ()
    %265 = vector.shape_cast %264 : vector<2x8x16xf32> to vector<16x16xf32>
    %c1_176 = arith.constant 1 : index
    %c0_177 = arith.constant 0 : index
    %c0_178 = arith.constant 0 : index
    %c0_179 = arith.constant 0 : index
    %266 = vector.load %arg14[%c1_176, %c0_177, %c0_178, %c0_179] : memref<2x2x16x32xf32, #tpu.memory_space<vmem>>, vector<1x1x16x32xf32>
    %267 = vector.shape_cast %266 : vector<1x1x16x32xf32> to vector<16x32xf32>
    %cst_180 = arith.constant dense<0.000000e+00> : vector<16x32xf32>
    %268 = tpu.matmul %265, %267, %cst_180 {dimension_numbers = #tpu.dot_dimension_numbers<[1], [0], [0], [1], [0, 0, 1, 1], [], []>} : vector<16x16xf32>, vector<16x32xf32>, vector<16x32xf32> -> vector<16x32xf32>
    %c1_181 = arith.constant 1 : index
    %c1_182 = arith.constant 1 : index
    %c0_183 = arith.constant 0 : index
    %c0_184 = arith.constant 0 : index
    %269 = vector.load %arg8[%c1_181, %c1_182, %c0_183, %c0_184] : memref<2x2x32x16xf32, #tpu.memory_space<vmem>>, vector<1x1x32x16xf32>
    %270 = vector.shape_cast %269 : vector<1x1x32x16xf32> to vector<32x16xf32>
    %cst_185 = arith.constant dense<0.000000e+00> : vector<16x16xf32>
    %271 = tpu.matmul %225, %270, %cst_185 {dimension_numbers = #tpu.dot_dimension_numbers<[1], [0], [0], [1], [0, 0, 1, 1], [], []>} : vector<16x32xf32>, vector<32x16xf32>, vector<16x16xf32> -> vector<16x16xf32>
    %c1_186 = arith.constant 1 : index
    %c1_187 = arith.constant 1 : index
    %c0_188 = arith.constant 0 : index
    %c0_189 = arith.constant 0 : index
    %272 = vector.load %arg9[%c1_186, %c1_187, %c0_188, %c0_189] : memref<2x2x1x16xf32, #tpu.memory_space<vmem>>, vector<1x1x1x16xf32>
    %273 = vector.shape_cast %272 : vector<1x1x1x16xf32> to vector<1x16xf32>
    %274 = vector.broadcast %273 : vector<1x16xf32> to vector<16x16xf32>
    %275 = arith.addf %271, %274 : vector<16x16xf32>
    %c1_190 = arith.constant 1 : index
    %c1_191 = arith.constant 1 : index
    %c0_192 = arith.constant 0 : index
    %c0_193 = arith.constant 0 : index
    %276 = vector.load %arg10[%c1_190, %c1_191, %c0_192, %c0_193] : memref<2x2x32x16xf32, #tpu.memory_space<vmem>>, vector<1x1x32x16xf32>
    %277 = vector.shape_cast %276 : vector<1x1x32x16xf32> to vector<32x16xf32>
    %cst_194 = arith.constant dense<0.000000e+00> : vector<16x16xf32>
    %278 = tpu.matmul %225, %277, %cst_194 {dimension_numbers = #tpu.dot_dimension_numbers<[1], [0], [0], [1], [0, 0, 1, 1], [], []>} : vector<16x32xf32>, vector<32x16xf32>, vector<16x16xf32> -> vector<16x16xf32>
    %c1_195 = arith.constant 1 : index
    %c1_196 = arith.constant 1 : index
    %c0_197 = arith.constant 0 : index
    %c0_198 = arith.constant 0 : index
    %279 = vector.load %arg11[%c1_195, %c1_196, %c0_197, %c0_198] : memref<2x2x1x16xf32, #tpu.memory_space<vmem>>, vector<1x1x1x16xf32>
    %280 = vector.shape_cast %279 : vector<1x1x1x16xf32> to vector<1x16xf32>
    %281 = vector.broadcast %280 : vector<1x16xf32> to vector<16x16xf32>
    %282 = arith.addf %278, %281 : vector<16x16xf32>
    %c1_199 = arith.constant 1 : index
    %c1_200 = arith.constant 1 : index
    %c0_201 = arith.constant 0 : index
    %c0_202 = arith.constant 0 : index
    %283 = vector.load %arg12[%c1_199, %c1_200, %c0_201, %c0_202] : memref<2x2x32x16xf32, #tpu.memory_space<vmem>>, vector<1x1x32x16xf32>
    %284 = vector.shape_cast %283 : vector<1x1x32x16xf32> to vector<32x16xf32>
    %cst_203 = arith.constant dense<0.000000e+00> : vector<16x16xf32>
    %285 = tpu.matmul %225, %284, %cst_203 {dimension_numbers = #tpu.dot_dimension_numbers<[1], [0], [0], [1], [0, 0, 1, 1], [], []>} : vector<16x32xf32>, vector<32x16xf32>, vector<16x16xf32> -> vector<16x16xf32>
    %c1_204 = arith.constant 1 : index
    %c1_205 = arith.constant 1 : index
    %c0_206 = arith.constant 0 : index
    %c0_207 = arith.constant 0 : index
    %286 = vector.load %arg13[%c1_204, %c1_205, %c0_206, %c0_207] : memref<2x2x1x16xf32, #tpu.memory_space<vmem>>, vector<1x1x1x16xf32>
    %287 = vector.shape_cast %286 : vector<1x1x1x16xf32> to vector<1x16xf32>
    %288 = vector.broadcast %287 : vector<1x16xf32> to vector<16x16xf32>
    %289 = arith.addf %285, %288 : vector<16x16xf32>
    %290 = vector.shape_cast %275 : vector<16x16xf32> to vector<2x8x16xf32>
    %291 = vector.shape_cast %282 : vector<16x16xf32> to vector<2x8x16xf32>
    %292 = vector.shape_cast %289 : vector<16x16xf32> to vector<2x8x16xf32>
    "tpu.trace_start"() <{level = 10 : i32, message = "bqd,bkd->bqk"}> : () -> ()
    %cst_208 = arith.constant dense<0.000000e+00> : vector<2x8x8xf32>
    %293 = tpu.matmul %290, %291, %cst_208 {dimension_numbers = #tpu.dot_dimension_numbers<[2], [2], [1], [1], [0, 0, 0, 1, 1, 1], [0], [0]>} : vector<2x8x16xf32>, vector<2x8x16xf32>, vector<2x8x8xf32> -> vector<2x8x8xf32>
    "tpu.trace_stop"() : () -> ()
    %cst_209 = arith.constant 2.500000e-01 : f32
    %294 = vector.broadcast %cst_209 : f32 to vector<2x8x8xf32>
    %295 = arith.mulf %293, %294 : vector<2x8x8xf32>
    %296 = vector.broadcast %53 : vector<2x1x8xf32> to vector<2x8x8xf32>
    %297 = arith.addf %295, %296 : vector<2x8x8xf32>
    %cst_210 = arith.constant dense<0xFF800000> : vector<2x8xf32>
    %298 = vector.multi_reduction <maximumf>, %297, %cst_210 [2] : vector<2x8x8xf32> to vector<2x8xf32>
    %299 = vector.shape_cast %298 : vector<2x8xf32> to vector<2x8x1xf32>
    %300 = vector.broadcast %299 : vector<2x8x1xf32> to vector<2x8x8xf32>
    %301 = arith.subf %297, %300 : vector<2x8x8xf32>
    %302 = math.exp %301 : vector<2x8x8xf32>
    %cst_211 = arith.constant dense<0.000000e+00> : vector<2x8xf32>
    %303 = vector.multi_reduction <add>, %302, %cst_211 [2] : vector<2x8x8xf32> to vector<2x8xf32>
    %304 = vector.shape_cast %303 : vector<2x8xf32> to vector<2x8x1xf32>
    %305 = vector.broadcast %304 : vector<2x8x1xf32> to vector<2x8x8xf32>
    %306 = arith.divf %302, %305 : vector<2x8x8xf32>
    "tpu.trace_start"() <{level = 10 : i32, message = "bqk,bkd->bqd"}> : () -> ()
    %cst_212 = arith.constant dense<0.000000e+00> : vector<2x8x16xf32>
    %307 = tpu.matmul %306, %292, %cst_212 {dimension_numbers = #tpu.dot_dimension_numbers<[2], [1], [1], [2], [0, 0, 0, 1, 1, 2], [0], [0]>} : vector<2x8x8xf32>, vector<2x8x16xf32>, vector<2x8x16xf32> -> vector<2x8x16xf32>
    "tpu.trace_stop"() : () -> ()
    %308 = vector.shape_cast %307 : vector<2x8x16xf32> to vector<16x16xf32>
    %c1_213 = arith.constant 1 : index
    %c1_214 = arith.constant 1 : index
    %c0_215 = arith.constant 0 : index
    %c0_216 = arith.constant 0 : index
    %309 = vector.load %arg14[%c1_213, %c1_214, %c0_215, %c0_216] : memref<2x2x16x32xf32, #tpu.memory_space<vmem>>, vector<1x1x16x32xf32>
    %310 = vector.shape_cast %309 : vector<1x1x16x32xf32> to vector<16x32xf32>
    %cst_217 = arith.constant dense<0.000000e+00> : vector<16x32xf32>
    %311 = tpu.matmul %308, %310, %cst_217 {dimension_numbers = #tpu.dot_dimension_numbers<[1], [0], [0], [1], [0, 0, 1, 1], [], []>} : vector<16x16xf32>, vector<16x32xf32>, vector<16x32xf32> -> vector<16x32xf32>
    %312 = arith.addf %268, %311 : vector<16x32xf32>
    %c1_218 = arith.constant 1 : index
    %c0_219 = arith.constant 0 : index
    %c0_220 = arith.constant 0 : index
    %313 = vector.load %arg15[%c1_218, %c0_219, %c0_220] : memref<2x1x32xf32, #tpu.memory_space<vmem>>, vector<1x1x32xf32>
    %314 = vector.shape_cast %313 : vector<1x1x32xf32> to vector<1x32xf32>
    %315 = vector.broadcast %314 : vector<1x32xf32> to vector<16x32xf32>
    %316 = arith.addf %312, %315 : vector<16x32xf32>
    %317 = arith.addf %316, %225 : vector<16x32xf32>
    %c1_221 = arith.constant 1 : index
    %c0_222 = arith.constant 0 : index
    %c0_223 = arith.constant 0 : index
    %318 = vector.load %arg16[%c1_221, %c0_222, %c0_223] : memref<2x1x32xf32, #tpu.memory_space<vmem>>, vector<1x1x32xf32>
    %319 = vector.shape_cast %318 : vector<1x1x32xf32> to vector<1x32xf32>
    %c1_224 = arith.constant 1 : index
    %c0_225 = arith.constant 0 : index
    %c0_226 = arith.constant 0 : index
    %320 = vector.load %arg17[%c1_224, %c0_225, %c0_226] : memref<2x1x32xf32, #tpu.memory_space<vmem>>, vector<1x1x32xf32>
    %321 = vector.shape_cast %320 : vector<1x1x32xf32> to vector<1x32xf32>
    %cst_227 = arith.constant dense<0.000000e+00> : vector<16xf32>
    %322 = vector.multi_reduction <add>, %317, %cst_227 [1] : vector<16x32xf32> to vector<16xf32>
    %323 = vector.shape_cast %322 : vector<16xf32> to vector<16x1xf32>
    %cst_228 = arith.constant 3.200000e+01 : f32
    %324 = vector.broadcast %cst_228 : f32 to vector<16x1xf32>
    %325 = arith.divf %323, %324 : vector<16x1xf32>
    %326 = vector.broadcast %325 : vector<16x1xf32> to vector<16x32xf32>
    %327 = arith.subf %317, %326 : vector<16x32xf32>
    %328 = arith.mulf %327, %327 : vector<16x32xf32>
    %cst_229 = arith.constant dense<0.000000e+00> : vector<16xf32>
    %329 = vector.multi_reduction <add>, %328, %cst_229 [1] : vector<16x32xf32> to vector<16xf32>
    %330 = vector.shape_cast %329 : vector<16xf32> to vector<16x1xf32>
    %cst_230 = arith.constant 3.200000e+01 : f32
    %331 = vector.broadcast %cst_230 : f32 to vector<16x1xf32>
    %332 = arith.divf %330, %331 : vector<16x1xf32>
    %333 = vector.broadcast %325 : vector<16x1xf32> to vector<16x32xf32>
    %334 = arith.subf %317, %333 : vector<16x32xf32>
    %cst_231 = arith.constant 9.99999996E-13 : f32
    %335 = vector.broadcast %cst_231 : f32 to vector<16x1xf32>
    %336 = arith.addf %332, %335 : vector<16x1xf32>
    %337 = math.rsqrt %336 : vector<16x1xf32>
    %338 = vector.broadcast %337 : vector<16x1xf32> to vector<16x32xf32>
    %339 = arith.mulf %334, %338 : vector<16x32xf32>
    %340 = vector.broadcast %319 : vector<1x32xf32> to vector<16x32xf32>
    %341 = arith.mulf %339, %340 : vector<16x32xf32>
    %342 = vector.broadcast %321 : vector<1x32xf32> to vector<16x32xf32>
    %343 = arith.addf %341, %342 : vector<16x32xf32>
    %c1_232 = arith.constant 1 : index
    %c0_233 = arith.constant 0 : index
    %c0_234 = arith.constant 0 : index
    %344 = vector.load %arg18[%c1_232, %c0_233, %c0_234] : memref<2x32x64xf32, #tpu.memory_space<vmem>>, vector<1x32x64xf32>
    %345 = vector.shape_cast %344 : vector<1x32x64xf32> to vector<32x64xf32>
    %cst_235 = arith.constant dense<0.000000e+00> : vector<16x64xf32>
    %346 = tpu.matmul %343, %345, %cst_235 {dimension_numbers = #tpu.dot_dimension_numbers<[1], [0], [0], [1], [0, 0, 1, 1], [], []>} : vector<16x32xf32>, vector<32x64xf32>, vector<16x64xf32> -> vector<16x64xf32>
    %c1_236 = arith.constant 1 : index
    %c0_237 = arith.constant 0 : index
    %c0_238 = arith.constant 0 : index
    %347 = vector.load %arg19[%c1_236, %c0_237, %c0_238] : memref<2x1x64xf32, #tpu.memory_space<vmem>>, vector<1x1x64xf32>
    %348 = vector.shape_cast %347 : vector<1x1x64xf32> to vector<1x64xf32>
    %349 = vector.broadcast %348 : vector<1x64xf32> to vector<16x64xf32>
    %350 = arith.addf %346, %349 : vector<16x64xf32>
    %351 = arith.mulf %350, %350 : vector<16x64xf32>
    %352 = arith.mulf %350, %351 : vector<16x64xf32>
    %cst_239 = arith.constant 4.471500e-02 : f32
    %353 = vector.broadcast %cst_239 : f32 to vector<16x64xf32>
    %354 = arith.mulf %353, %352 : vector<16x64xf32>
    %355 = arith.addf %350, %354 : vector<16x64xf32>
    %cst_240 = arith.constant 0.797884583 : f32
    %356 = vector.broadcast %cst_240 : f32 to vector<16x64xf32>
    %357 = arith.mulf %356, %355 : vector<16x64xf32>
    %358 = math.tanh %357 : vector<16x64xf32>
    %cst_241 = arith.constant 1.000000e+00 : f32
    %359 = vector.broadcast %cst_241 : f32 to vector<16x64xf32>
    %360 = arith.addf %359, %358 : vector<16x64xf32>
    %cst_242 = arith.constant 5.000000e-01 : f32
    %361 = vector.broadcast %cst_242 : f32 to vector<16x64xf32>
    %362 = arith.mulf %361, %360 : vector<16x64xf32>
    %363 = arith.mulf %350, %362 : vector<16x64xf32>
    %c1_243 = arith.constant 1 : index
    %c0_244 = arith.constant 0 : index
    %c0_245 = arith.constant 0 : index
    %364 = vector.load %arg20[%c1_243, %c0_244, %c0_245] : memref<2x64x32xf32, #tpu.memory_space<vmem>>, vector<1x64x32xf32>
    %365 = vector.shape_cast %364 : vector<1x64x32xf32> to vector<64x32xf32>
    %cst_246 = arith.constant dense<0.000000e+00> : vector<16x32xf32>
    %366 = tpu.matmul %363, %365, %cst_246 {dimension_numbers = #tpu.dot_dimension_numbers<[1], [0], [0], [1], [0, 0, 1, 1], [], []>} : vector<16x64xf32>, vector<64x32xf32>, vector<16x32xf32> -> vector<16x32xf32>
    %c1_247 = arith.constant 1 : index
    %c0_248 = arith.constant 0 : index
    %c0_249 = arith.constant 0 : index
    %367 = vector.load %arg21[%c1_247, %c0_248, %c0_249] : memref<2x1x32xf32, #tpu.memory_space<vmem>>, vector<1x1x32xf32>
    %368 = vector.shape_cast %367 : vector<1x1x32xf32> to vector<1x32xf32>
    %369 = vector.broadcast %368 : vector<1x32xf32> to vector<16x32xf32>
    %370 = arith.addf %366, %369 : vector<16x32xf32>
    %371 = arith.addf %370, %343 : vector<16x32xf32>
    %c1_250 = arith.constant 1 : index
    %c0_251 = arith.constant 0 : index
    %c0_252 = arith.constant 0 : index
    %372 = vector.load %arg22[%c1_250, %c0_251, %c0_252] : memref<2x1x32xf32, #tpu.memory_space<vmem>>, vector<1x1x32xf32>
    %373 = vector.shape_cast %372 : vector<1x1x32xf32> to vector<1x32xf32>
    %c1_253 = arith.constant 1 : index
    %c0_254 = arith.constant 0 : index
    %c0_255 = arith.constant 0 : index
    %374 = vector.load %arg23[%c1_253, %c0_254, %c0_255] : memref<2x1x32xf32, #tpu.memory_space<vmem>>, vector<1x1x32xf32>
    %375 = vector.shape_cast %374 : vector<1x1x32xf32> to vector<1x32xf32>
    %cst_256 = arith.constant dense<0.000000e+00> : vector<16xf32>
    %376 = vector.multi_reduction <add>, %371, %cst_256 [1] : vector<16x32xf32> to vector<16xf32>
    %377 = vector.shape_cast %376 : vector<16xf32> to vector<16x1xf32>
    %cst_257 = arith.constant 3.200000e+01 : f32
    %378 = vector.broadcast %cst_257 : f32 to vector<16x1xf32>
    %379 = arith.divf %377, %378 : vector<16x1xf32>
    %380 = vector.broadcast %379 : vector<16x1xf32> to vector<16x32xf32>
    %381 = arith.subf %371, %380 : vector<16x32xf32>
    %382 = arith.mulf %381, %381 : vector<16x32xf32>
    %cst_258 = arith.constant dense<0.000000e+00> : vector<16xf32>
    %383 = vector.multi_reduction <add>, %382, %cst_258 [1] : vector<16x32xf32> to vector<16xf32>
    %384 = vector.shape_cast %383 : vector<16xf32> to vector<16x1xf32>
    %cst_259 = arith.constant 3.200000e+01 : f32
    %385 = vector.broadcast %cst_259 : f32 to vector<16x1xf32>
    %386 = arith.divf %384, %385 : vector<16x1xf32>
    %387 = vector.broadcast %379 : vector<16x1xf32> to vector<16x32xf32>
    %388 = arith.subf %371, %387 : vector<16x32xf32>
    %cst_260 = arith.constant 9.99999996E-13 : f32
    %389 = vector.broadcast %cst_260 : f32 to vector<16x1xf32>
    %390 = arith.addf %386, %389 : vector<16x1xf32>
    %391 = math.rsqrt %390 : vector<16x1xf32>
    %392 = vector.broadcast %391 : vector<16x1xf32> to vector<16x32xf32>
    %393 = arith.mulf %388, %392 : vector<16x32xf32>
    %394 = vector.broadcast %373 : vector<1x32xf32> to vector<16x32xf32>
    %395 = arith.mulf %393, %394 : vector<16x32xf32>
    %396 = vector.broadcast %375 : vector<1x32xf32> to vector<16x32xf32>
    %397 = arith.addf %395, %396 : vector<16x32xf32>
    %398 = vector.shape_cast %397 : vector<16x32xf32> to vector<2x8x32xf32>
    %399 = vector.extract_strided_slice %398 {offsets = [0, 0, 0], sizes = [2, 1, 32], strides = [1, 1, 1]} : vector<2x8x32xf32> to vector<2x1x32xf32>
    %400 = vector.shape_cast %399 : vector<2x1x32xf32> to vector<2x32xf32>
    %c0_261 = arith.constant 0 : index
    %c0_262 = arith.constant 0 : index
    %401 = vector.load %arg24[%c0_261, %c0_262] : memref<32x512xf32, #tpu.memory_space<vmem>>, vector<32x512xf32>
    %cst_263 = arith.constant dense<0.000000e+00> : vector<2x512xf32>
    %402 = tpu.matmul %400, %401, %cst_263 {dimension_numbers = #tpu.dot_dimension_numbers<[1], [0], [0], [1], [0, 0, 1, 1], [], []>} : vector<2x32xf32>, vector<32x512xf32>, vector<2x512xf32> -> vector<2x512xf32>
    %c0_264 = arith.constant 0 : index
    %c0_265 = arith.constant 0 : index
    %403 = vector.load %arg25[%c0_264, %c0_265] : memref<1x512xf32, #tpu.memory_space<vmem>>, vector<1x512xf32>
    %404 = vector.broadcast %403 : vector<1x512xf32> to vector<2x512xf32>
    %405 = arith.addf %402, %404 : vector<2x512xf32>
    %cst_266 = arith.constant 0.000000e+00 : f32
    %406 = vector.broadcast %cst_266 : f32 to vector<2x512xf32>
    %407 = arith.maximumf %405, %406 : vector<2x512xf32>
    %c0_267 = arith.constant 0 : index
    %c0_268 = arith.constant 0 : index
    %408 = vector.load %arg26[%c0_267, %c0_268] : memref<512x5xf32, #tpu.memory_space<vmem>>, vector<512x5xf32>
    %cst_269 = arith.constant dense<0.000000e+00> : vector<2x5xf32>
    %409 = tpu.matmul %407, %408, %cst_269 {dimension_numbers = #tpu.dot_dimension_numbers<[1], [0], [0], [1], [0, 0, 1, 1], [], []>} : vector<2x512xf32>, vector<512x5xf32>, vector<2x5xf32> -> vector<2x5xf32>
    %c0_270 = arith.constant 0 : index
    %c0_271 = arith.constant 0 : index
    %410 = vector.load %arg27[%c0_270, %c0_271] : memref<1x5xf32, #tpu.memory_space<vmem>>, vector<1x5xf32>
    %411 = vector.broadcast %410 : vector<1x5xf32> to vector<2x5xf32>
    %412 = arith.addf %409, %411 : vector<2x5xf32>
    %c0_272 = arith.constant 0 : index
    %c0_273 = arith.constant 0 : index
    %413 = vector.load %arg28[%c0_272, %c0_273] : memref<2x5xf32, #tpu.memory_space<vmem>>, vector<2x5xf32>
    tpu.vector_store %arg28[%c0_272, %c0_273], %412 {strides = array<i32>} : memref<2x5xf32, #tpu.memory_space<vmem>>, vector<2x5xf32>,
    return
  }
}

</mosaic_0001>

<bundles_post_ra>
// kernel: bert_text_classification.1
= control target key start
LH: loop header
LB: loop body
LE: loop exit
PB: predicated region body
PF: predicated region fallthrough
CT: control target
= control target key end

     0   :  { %s6244_s0 = inlined_call_operand.vmem [shape: s32[16,1], index: 0, kind: input, shape index: {}]   ;;  %s6245_s1 = inlined_call_operand.vmem [shape: s32[16,1], index: 1, kind: input, shape index: {}]   ;;  %s6246_s2 = inlined_call_operand.vmem [shape: f32[2,1,8], index: 2, kind: input, shape index: {}]   ;;  %s6247_s3 = inlined_call_operand.vmem [shape: f32[100,32], index: 3, kind: input, shape index: {}]   ;;  %s6248_s4 = inlined_call_operand.vmem [shape: f32[16,32], index: 4, kind: input, shape index: {}]   ;;  %s6249_s5 = inlined_call_operand.vmem [shape: f32[2,32], index: 5, kind: input, shape index: {}]   ;;  %s6250_s6 = inlined_call_operand.vmem [shape: f32[1,32], index: 6, kind: input, shape index: {}]   ;;  %s6251_s7 = inlined_call_operand.vmem [shape: f32[1,32], index: 7, kind: input, shape index: {}]   ;;  %s6252_s8 = inlined_call_operand.vmem [shape: f32[2,2,32,16], index: 8, kind: input, shape index: {}]   ;;  %s6253_s9 = inlined_call_operand.vmem [shape: f32[2,2,1,16], index: 9, kind: input, shape index: {}]   ;;  %s6254_s10 = inlined_call_operand.vmem [shape: f32[2,2,32,16], index: 10, kind: input, shape index: {}]   ;;  %s6255_s11 = inlined_call_operand.vmem [shape: f32[2,2,1,16], index: 11, kind: input, shape index: {}]   ;;  %s6256_s12 = inlined_call_operand.vmem [shape: f32[2,2,32,16], index: 12, kind: input, shape index: {}]   ;;  %s6257_s13 = inlined_call_operand.vmem [shape: f32[2,2,1,16], index: 13, kind: input, shape index: {}]   ;;  %s6258_s14 = inlined_call_operand.vmem [shape: f32[2,2,16,32], index: 14, kind: input, shape index: {}]   ;;  %s6259_s15 = inlined_call_operand.vmem [shape: f32[2,1,32], index: 15, kind: input, shape index: {}]   ;;  %s6260_s16 = inlined_call_operand.vmem [shape: f32[2,1,32], index: 16, kind: input, shape index: {}]   ;;  %s6261_s17 = inlined_call_operand.vmem [shape: f32[2,1,32], index: 17, kind: input, shape index: {}]   ;;  %s6262_s18 = inlined_call_operand.vmem [shape: f32[2,32,64], index: 18, kind: input, shape index: {}]   ;;  %s6263_s19 = inlined_call_operand.vmem [shape: f32[2,1,64], index: 19, kind: input, shape index: {}]   ;;  %s6264_s20 = inlined_call_operand.vmem [shape: f32[2,64,32], index: 20, kind: input, shape index: {}]   ;;  %s6265_s21 = inlined_call_operand.vmem [shape: f32[2,1,32], index: 21, kind: input, shape index: {}]   ;;  %s6266_s22 = inlined_call_operand.vmem [shape: f32[2,1,32], index: 22, kind: input, shape index: {}]   ;;  %s6267_s23 = inlined_call_operand.vmem [shape: f32[2,1,32], index: 23, kind: input, shape index: {}]   ;;  %s6268_s24 = inlined_call_operand.vmem [shape: f32[32,512], index: 24, kind: input, shape index: {}]   ;;  %s6269_s25 = inlined_call_operand.vmem [shape: f32[1,512], index: 25, kind: input, shape index: {}]   ;;  %s6270_s26 = inlined_call_operand.vmem [shape: f32[512,5], index: 26, kind: input, shape index: {}]   ;;  %s6271_s27 = inlined_call_operand.vmem [shape: f32[1,5], index: 27, kind: input, shape index: {}]   ;;  %s6272_s28 = inlined_call_operand.hbm [shape: f32[2,5], index: 28, kind: output, shape index: {}]  }
   0x1   :  { %6282 = sst [smem:[#allocation5_spill]] %s6244_s0 }
   0x2   :  { %6283 = sst [smem:[#allocation6_spill]] %s6245_s1 }
   0x3   :  { %6284 = sst [smem:[#allocation7_spill]] %s6246_s2 }
   0x4   :  { %6285 = sst [smem:[#allocation8_spill]] %s6247_s3 }
   0x5   :  { %6286 = sst [smem:[#allocation9_spill]] %s6248_s4 }
   0x6   :  { %6287 = sst [smem:[#allocation10_spill]] %s6249_s5 }
   0x7   :  { %6288 = sst [smem:[#allocation11_spill]] %s6250_s6 }
   0x8   :  { %6289 = sst [smem:[#allocation12_spill]] %s6251_s7 }
   0x9   :  { %6290 = sst [smem:[#allocation13_spill]] %s6252_s8 }
   0xa   :  { %6291 = sst [smem:[#allocation14_spill]] %s6253_s9 }
   0xb   :  { %6292 = sst [smem:[#allocation15_spill]] %s6254_s10 }
   0xc   :  { %6293 = sst [smem:[#allocation16_spill]] %s6255_s11 }
   0xd   :  { %6294 = sst [smem:[#allocation17_spill]] %s6256_s12 }
   0xe   :  { %s6295_s9 = sld [smem:[#allocation5_spill]]  ;;  %v5211_v2 = vmov 0   ;;  %s6296_s0 = sld [smem:[#allocation8_spill]] }
   0xf   :  { %5126 = vset.pattern.permute.xlu1 %v5211_v2  ;;  %5125 = vset.pattern.permute.xlu0 %v5211_v2  ;;  %s6297_s12 = sld [smem:[#allocation6_spill]] }
  0x14   :  { %v91_v0 = vld [vmem:[%s6295_s9 + $0x8] sm:$0xff]  ;;  %v90_v1 = vld [vmem:[%s6295_s9] sm:$0xff]  ;;  %v118_v7 = vld [vmem:[%s6296_s0 + $0x10] sm:$0xff] }
  0x15   :  { %v116_v3 = vld [vmem:[%s6296_s0] sm:$0xff]  ;;  %v117_v4 = vld [vmem:[%s6296_s0 + $0x8] sm:$0xff]  ;;  %100 = vperm.xlu1 %5126, %v91_v0   ;;  %97 = vperm.xlu0 %5125, %v90_v1   ;;  %v119_v8 = vld [vmem:[%s6296_s0 + $0x18] sm:$0xff] }
  0x16   :  { %v93_v5 = vld [vmem:[%s6297_s12 + $0x8] sm:$0xff]  ;;  %v4851_v6 = vpack.c.bf16 %v117_v4, %v116_v3  ;;  %v92_v9 = vld [vmem:[%s6297_s12] sm:$0xff]  ;;  %v4855_v10 = vpack.c.bf16 %v119_v8, %v118_v7 }
  0x17   :  { %v120_v11 = vld [vmem:[%s6296_s0 + $0x20] sm:$0xff]  ;;  %v121_v12 = vld [vmem:[%s6296_s0 + $0x28] sm:$0xff] }
  0x18   :  { %4852 = vmatprep.subr.bf16.mxu0 %v4851_v6 }
  0x19   :  { %4854 = vmatpush3.bf16.msra.mxu0 %v4851_v6 }
  0x1a   :  { %33 = vsyncpa [#allocation3], 0  ;;  %110 = vperm.xlu1 %5126, %v93_v5   ;;  %107 = vperm.xlu0 %5125, %v92_v9   ;;  %v4859_v13 = vpack.c.bf16 %v121_v12, %v120_v11  ;;  %s6298_s7 = sld [smem:[#allocation10_spill]]  ;;  %vm137_vm0 = vcmask 1041408   ;;  %v122_v15 = vld [vmem:[%s6296_s0 + $0x30] sm:$0xff]  ;;  %v123_v16 = vld [vmem:[%s6296_s0 + $0x38] sm:$0xff]  ;;  %v94_v26 = vlaneseq }
  0x1b   :  { %4856 = vmatprep.subr.bf16.mxu0 %v4855_v10  ;;  %v4863_v17 = vpack.c.bf16 %v123_v16, %v122_v15  ;;  %v124_v18 = vld [vmem:[%s6296_s0 + $0x40] sm:$0xff]  ;;  %v125_v19 = vld [vmem:[%s6296_s0 + $0x48] sm:$0xff]  ;;  %v126_v21 = vld [vmem:[%s6296_s0 + $0x50] sm:$0xff]  ;;  %vm223_vm1 = vcmask 1043456   ;;  %v5212_v25 = vmov 0.0   ;;  %vm216_vm2 = vcmask 818176  }
  0x1c   :  { %v4867_v20 = vpack.c.bf16 %v125_v19, %v124_v18  ;;  %v127_v22 = vld [vmem:[%s6296_s0 + $0x58] sm:$0xff]  ;;  %v128_v24 = vld [vmem:[%s6296_s0 + $0x60] sm:$0xf]  ;;  %v95_v27 = vand.u32 127, %v94_v26  ;;  %vm130_vm5 = vcmask 15360   ;;  %s6299_s1 = sld [smem:[#allocation9_spill]] }
  0x1d   :  { %4858 = vmatpush3.bf16.msra.mxu0 %v4855_v10  ;;  %v4871_v23 = vpack.c.bf16 %v127_v22, %v126_v21  ;;  %vm307_vm8 = vcmask 261120   ;;  %s6300_s5 = sld [smem:[#allocation13_spill]]  ;;  %s6302_s8 = sld [smem:[#allocation11_spill]]  ;;  %vm5213_vm9 = vmmov 0   ;;  %vm621_vm10 = vcmask 130048  }
  0x1e   :  { %4860 = vmatprep.subr.bf16.mxu0 %v4859_v13  ;;  %s6303_s3 = sld [smem:[#allocation12_spill]]  ;;  %s6304_s12 = sld [smem:[#allocation17_spill]]  ;;  %vm790_vm11 = vcmask 64512   ;;  %vm1894_vm12 = vcmask 523264   ;;  %vm3729_vm13 = vcmask 1041409   ;;  %vm4090_vm14 = vcmask 33792  }
  0x1f   :  { %s6305_s11 = sld [smem:[#allocation16_spill]]  ;;  %s6306_s0 = sld [smem:[#allocation14_spill]] }
  0x20   :  { %v129_v14 = vld [vmem:[%s6298_s7] sm:$0x3]  ;;  %s6301_s7 = sld [smem:[#allocation15_spill]]  ;;  %s5214_s9 = smov [#allocation2]  }
  0x21   :  { %4517 = vmatprep.subr.msk.mxu1 %vm137_vm0, %v129_v14  ;;  %4862 = vmatpush3.bf16.msra.mxu0 %v4859_v13  ;;  %s6307_s30 = sld [smem:[#allocation7_spill]] }
  0x22   :  { %4518 = vmatpush3.msk.msra.mxu1 %vm137_vm0, %v129_v14  ;;  %4864 = vmatprep.subr.bf16.mxu0 %v4863_v17  ;;  %v302_v39 = vld [vmem:[%s6299_s1] sm:$0xff] }
  0x23   :  { %v357_v57 = vld [vmem:[%s6300_s5] sm:$0xff]  ;;  %v358_v58 = vld [vmem:[%s6300_s5 + $0x8] sm:$0xff]  ;;  %v359_v60 = vld [vmem:[%s6300_s5 + $0x10] sm:$0xff] }
  0x24   :  { %v4875_v59 = vpack.c.bf16 %v358_v58, %v357_v57  ;;  %v360_v61 = vld [vmem:[%s6300_s5 + $0x18] sm:$0xff]  ;;  %v4112_v9 = vld [vmem:[%s6302_s8] ss:$0 sm:$0xff]  ;;  %v536_v22 = vld [vmem:[%s6304_s12 + $0x8] sm:$0xff] }
  0x25   :  { %4866 = vmatpush3.bf16.msra.mxu0 %v4863_v17  ;;  %v4879_v62 = vpack.c.bf16 %v360_v61, %v359_v60  ;;  %v4113_v11 = vld [vmem:[%s6303_s3] ss:$0 sm:$0xff] }
  0x26   :  { %4868 = vmatprep.subr.bf16.mxu0 %v4867_v20  ;;  %4876 = vmatprep.subr.bf16.mxu1 %v4875_v59  ;;  %v449_v63 = vld [vmem:[%s6301_s7] sm:$0xff]  ;;  %v450_v0 = vld [vmem:[%s6301_s7 + $0x8] sm:$0xff]  ;;  %v451_v16 = vld [vmem:[%s6301_s7 + $0x10] sm:$0xff] }
  0x27   :  { %v4883_v1 = vpack.c.bf16 %v450_v0, %v449_v63  ;;  %v452_v17 = vld [vmem:[%s6301_s7 + $0x18] sm:$0xff]  ;;  %v535_v21 = vld [vmem:[%s6304_s12] sm:$0xff] }
  0x29   :  { %4870 = vmatpush3.bf16.msra.mxu0 %v4867_v20  ;;  %v4887_v20 = vpack.c.bf16 %v452_v17, %v451_v16 }
  0x2a   :  { %4872 = vmatprep.subr.bf16.mxu0 %v4871_v23 }
  0x2d   :  { %4874 = vmatpush3.bf16.msra.mxu0 %v4871_v23  ;;  %v4891_v23 = vpack.c.bf16 %v536_v22, %v535_v21  ;;  %v4131_v22 = vld [vmem:[%s6300_s5 + $0x30] sm:$0xff] }
  0x2e   :  { %4546 = vmatprep.subr.msk.mxu0 %vm223_vm1, %v128_v24 }
  0x31   :  { %4547 = vmatpush3.msk.msra.mxu0 %vm223_vm1, %v128_v24  ;;  %v537_v24 = vld [vmem:[%s6304_s12 + $0x10] sm:$0xff] }
  0x32   :  { %4589 = vmatprep.subr.mxu0 %v5212_v25 }
  0x94   :  { %v101_v28 = vpop.permute.xlu1 %100  ;;  %v98_v29 = vpop.permute.xlu0 %97 }
  0x95   :  { %vm103_vm3 = vcmp.eq.s32.totalorder %v101_v28, %v95_v27  ;;  %vm102_vm4 = vcmp.eq.s32.totalorder %v98_v29, %v95_v27 }
  0x96   :  { %v105_v30 = vsel %vm103_vm3, 1.0, %v5212_v25  ;;  %v104_v31 = vsel %vm102_vm4, 1.0, %v5212_v25 }
  0x97   :  { %4548 = vmatprep.mubr.msk.f32.mxu0 %vm216_vm2, %v104_v31  ;;  %v4117_v31 = vld [vmem:[%s6305_s11] ss:$0 sm:$0xff] }
  0x98   :  { %4549 = vmatmul.mubr.msk.f32.vlgmr.msra.gmra.mrb[0].mxu0 %vm216_vm2, %v105_v30 }
  0x99   :  { %v111_v32 = vpop.permute.xlu1 %110  ;;  %v108_v33 = vpop.permute.xlu0 %107  ;;  %4591 = vmatprep.mubr.msk.f32.mxu0 %vm5213_vm9, %v5212_v25 }
  0x9a   :  { %vm113_vm6 = vcmp.eq.s32.totalorder %v111_v32, %v95_v27  ;;  %vm112_vm7 = vcmp.eq.s32.totalorder %v108_v33, %v95_v27  ;;  %v538_v27 = vld [vmem:[%s6304_s12 + $0x18] sm:$0xff]  ;;  %v4114_v33 = vld [vmem:[%s6306_s0] ss:$0 sm:$0xff] }
  0x9b   :  { %v115_v34 = vsel %vm113_vm6, 1.0, %v5212_v25  ;;  %v114_v35 = vsel %vm112_vm7, 1.0, %v5212_v25  ;;  %v4895_v28 = vpack.c.bf16 %v538_v27, %v537_v24 }
  0x9c   :  { %4519 = vmatprep.mubr.msk.f32.mxu1 %vm130_vm5, %v114_v35 }
  0x9d   :  { %4520 = vmatmul.mubr.msk.f32.vlgmr.msra.gmra.mrb[0].mxu1 %vm130_vm5, %v115_v34 }
  0x9e   :  { %4878 = vmatpush3.bf16.msra.mxu1 %v4875_v59 }
  0x9f   :  { %4880 = vmatprep.subr.bf16.mxu1 %v4879_v62 }
  0xa2   :  { %4882 = vmatpush3.bf16.msra.mxu1 %v4879_v62 }
  0xa3   :  { %4884 = vmatprep.subr.bf16.mxu1 %v4883_v1 }
 0x16b   :  { %v4550_v36 = vpop.f32.mrb[0].mxu0 }
 0x16c   :  { %v293_v37 = vpop.f32.mrb[1].mxu0 }
 0x170   :  { %v4521_v38 = vpop.f32.mrb[0].mxu1 }
 0x171   :  { %v299_v40 = vadd.f32 %v4550_v36, %v4521_v38  ;;  %v207_v41 = vpop.f32.mrb[1].mxu1 }
 0x172   :  { %v294_v42 = vadd.f32 %v293_v37, %v207_v41 }
 0x173   :  { %v304_v43 = vadd.f32 %v302_v39, %v299_v40 }
 0x174   :  { %v303_v44 = vadd.f32 %v302_v39, %v294_v42  ;;  %v4120_v39 = vld [vmem:[%s6257_s13] ss:$0 sm:$0xff] }
 0x175   :  { %v311_v45 = vsel %vm307_vm8, %v304_v43, 0.0 }
 0x176   :  { %312 = vadd.xlane.f32.xlu1 %v311_v45  ;;  %v308_v46 = vsel %vm307_vm8, %v303_v44, 0.0  ;;  %v351_v45 = vld [vmem:[%s6307_s30] sm:$0x1] }
 0x177   :  { %309 = vadd.xlane.f32.xlu0 %v308_v46  ;;  %v5516_v46 = vshrl.u32 %v94_v26, 7 }
 0x203   :  { %v313_v47 = vpop.xlane.xlu1 %312 }
 0x204   :  { %v316_v48 = vmul.f32 0.03125, %v313_v47  ;;  %v310_v49 = vpop.xlane.xlu0 %309 }
 0x205   :  { %v315_v50 = vmul.f32 0.03125, %v310_v49 }
 0x206   :  { %v318_v51 = vsub.f32 %v304_v43, %v316_v48  ;;  %v353_v48 = vsub.f32 1.0, %v351_v45  ;;  %v4134_v45 = vld [vmem:[%s6306_s0 + $0x1] ss:$0 sm:$0xff] }
 0x207   :  { %v317_v52 = vsub.f32 %v303_v44, %v315_v50  ;;  %v352_v44 = vld [vmem:[%s6307_s30 + $0x1] sm:$0x1]  ;;  %v5519_v50 = vsub.s32 0, %v5516_v46  ;;  %s4098_s30 = sshll.u32 %s5214_s9, 4  ;;  %s4099_s30 = int_to_ptr.vmem [resolvable:$true] %s4098_s30 }
 0x208   :  { %v320_v55 = vmul.f32 %v318_v51, %v318_v51  ;;  %v354_v47 = vsub.f32 1.0, %v352_v44  ;;  %p5192_p1 = scmp.lt.s32.totalorder %s4099_s30, %s4099_s30 }
 0x209   :  { %v319_v53 = vmul.f32 %v317_v52, %v317_v52 }
 0x20a   :  { %v324_v56 = vsel %vm307_vm8, %v320_v55, 0.0  ;;  %v356_v49 = vmul.f32 -1e+09, %v354_v47 }
 0x20b   :  { %v321_v54 = vsel %vm307_vm8, %v319_v53, 0.0 }
 0x20c   :  { %322 = vadd.xlane.f32.xlu0 %v321_v54 }
 0x210   :  { %325 = vadd.xlane.f32.xlu0 %v324_v56 }
 0x299   :  { %v323_v2 = vpop.xlane.xlu0 %322 }
 0x29a   :  { %v327_v3 = vmul.f32 0.03125, %v323_v2 }
 0x29c   :  { %v329_v4 = vadd.f32 1e-12, %v327_v3 }
 0x29d   :  { %v326_v5 = vpop.xlane.xlu0 %325 }
 0x29e   :  { %5127 = vrsqrt.f32 %v329_v4  ;;  %v328_v6 = vmul.f32 0.03125, %v326_v5 }
 0x2a0   :  { %v330_v7 = vadd.f32 1e-12, %v328_v6 }
 0x2a2   :  { %5129 = vrsqrt.f32 %v330_v7 }
 0x2a8   :  { %v5128_v8 = vpop.eup %5127 }
 0x2a9   :  { %v333_v10 = vmul.f32 %v5128_v8, %v317_v52  ;;  %v5522_v52 = vrot.slane %v356_v49, %v5519_v50 }
 0x2ab   :  { %v341_v12 = vmul.f32 %v4112_v9, %v333_v10  ;;  %v4138_v10 = vld [vmem:[%s6301_s7 + $0x28] sm:$0xff] }
 0x2ac   :  { %v5130_v13 = vpop.eup %5129 }
 0x2ad   :  { %v5451_v14 = vadd.f32 %v4113_v11, %v341_v12  ;;  %v334_v15 = vmul.f32 %v5130_v13, %v318_v51  ;;  %v355_v51 = vmul.f32 -1e+09, %v353_v48  ;;  %v4129_v12 = vld [vmem:[%s6300_s5 + $0x20] sm:$0xff]  ;;  %v4130_v13 = vld [vmem:[%s6300_s5 + $0x28] sm:$0xff] }
 0x2af   :  { %v342_v18 = vmul.f32 %v4112_v9, %v334_v15  ;;  %4559 = vmatprep.mubr.msk.f32.mxu1 %vm307_vm8, %v5451_v14  ;;  %v5525_v54 = vrot.slane %v355_v51, %v5519_v50  ;;  %v4137_v9 = vld [vmem:[%s6301_s7 + $0x20] sm:$0xff]  ;;  %v4899_v15 = vpack.c.bf16 %v4130_v13, %v4129_v12 }
 0x2b1   :  { %v5461_v19 = vadd.f32 %v4113_v11, %v342_v18  ;;  %v4907_v11 = vpack.c.bf16 %v4138_v10, %v4137_v9  ;;  %v4139_v18 = vld [vmem:[%s6301_s7 + $0x30] sm:$0xff] }
 0x2b3   :  { %4560 = vmatmul.mubr.msk.f32.vlgmr.msra.gmra.mrb[2].mxu1 %vm307_vm8, %v5461_v19 }
 0x2b4   :  { %4886 = vmatpush3.bf16.msra.mxu1 %v4883_v1  ;;  %4570 = vmatprep.mubr.msk.f32.mxu1 %vm307_vm8, %v5451_v14 }
 0x2b5   :  { %4888 = vmatprep.subr.bf16.mxu1 %v4887_v20 }
 0x2b8   :  { %4890 = vmatpush3.bf16.msra.mxu1 %v4887_v20  ;;  %v4140_v20 = vld [vmem:[%s6301_s7 + $0x38] sm:$0xff] }
 0x2b9   :  { %4892 = vmatprep.subr.bf16.mxu1 %v4891_v23 }
 0x2bb   :  { %4571 = vmatmul.mubr.msk.f32.vlgmr.msra.gmra.mrb[4].mxu1 %vm307_vm8, %v5461_v19 }
 0x2bc   :  { %4894 = vmatpush3.bf16.msra.mxu1 %v4891_v23  ;;  %4581 = vmatprep.mubr.msk.f32.mxu1 %vm307_vm8, %v5451_v14  ;;  %v4132_v23 = vld [vmem:[%s6300_s5 + $0x38] sm:$0xff] }
 0x2bd   :  { %4896 = vmatprep.subr.bf16.mxu1 %v4895_v28 }
 0x2c0   :  { %4898 = vmatpush3.bf16.msra.mxu1 %v4895_v28 }
 0x2c1   :  { %4584 = vmatprep.subr.mxu1 %v5212_v25 }
 0x2c3   :  { %4582 = vmatmul.mubr.msk.f32.vlgmr.msra.gmra.mrb[6].mxu1 %vm307_vm8, %v5461_v19 }
 0x2c4   :  { %4586 = vmatprep.mubr.msk.f32.mxu1 %vm5213_vm9, %v5212_v25 }
 0x386   :  { %v4561_v29 = vpop.f32.mrb[2].mxu1 }
 0x387   :  { %v440_v30 = vpop.f32.mrb[3].mxu1  ;;  %v446_v37 = vadd.f32 %v4561_v29, %v4114_v33  ;;  %v4911_v29 = vpack.c.bf16 %v4140_v20, %v4139_v18 }
 0x388   :  { %v441_v38 = vadd.f32 %v4114_v33, %v440_v30  ;;  %v4903_v30 = vpack.c.bf16 %v4132_v23, %v4131_v22  ;;  %v4159_v23 = vld [vmem:[%s6258_s14 + $0x10] sm:$0xff] }
 0x38e   :  { %v4572_v32 = vpop.f32.mrb[4].mxu1 }
 0x38f   :  { %v532_v34 = vadd.f32 %v4572_v32, %v4117_v31  ;;  %v526_v35 = vpop.f32.mrb[5].mxu1  ;;  %v4146_v32 = vld [vmem:[%s6304_s12 + $0x28] sm:$0xff] }
 0x390   :  { %v527_v36 = vadd.f32 %v4117_v31, %v526_v35  ;;  %v4145_v31 = vld [vmem:[%s6304_s12 + $0x20] sm:$0xff]  ;;  %v4148_v35 = vld [vmem:[%s6304_s12 + $0x38] sm:$0xff] }
 0x391   :  { %4590 = vmatpush3.xpose.msk.msra.mxu0 %vm621_vm10, %v532_v34  ;;  %v4915_v33 = vpack.c.bf16 %v4146_v32, %v4145_v31  ;;  %v4147_v34 = vld [vmem:[%s6304_s12 + $0x30] sm:$0xff] }
 0x392   :  { %4585 = vmatpush3.xpose.msk.msra.mxu1 %vm621_vm10, %v527_v36  ;;  %4599 = vmatprep.subr.mxu0 %v5212_v25  ;;  %v4919_v36 = vpack.c.bf16 %v4148_v35, %v4147_v34  ;;  %v4165_v35 = vld [vmem:[%s6259_s15] ss:$0 sm:$0xff] }
 0x393   :  { %4594 = vmatprep.subr.mxu1 %v5212_v25 }
 0x394   :  { %4592 = vmatmul.mubr.msk.f32.vlgmr.msra.gmra.mrb[2].mxu0 %vm621_vm10, %v446_v37 }
 0x395   :  { %4587 = vmatmul.mubr.msk.f32.vlgmr.msra.gmra.mrb[8].mxu1 %vm621_vm10, %v441_v38  ;;  %4601 = vmatprep.mubr.msk.f32.mxu0 %vm5213_vm9, %v5212_v25 }
 0x396   :  { %v4583_v40 = vpop.f32.mrb[6].mxu1  ;;  %4596 = vmatprep.mubr.msk.f32.mxu1 %vm5213_vm9, %v5212_v25 }
 0x397   :  { %v618_v41 = vadd.f32 %v4583_v40, %v4120_v39  ;;  %v612_v42 = vpop.f32.mrb[7].mxu1 }
 0x398   :  { %v613_v43 = vadd.f32 %v4120_v39, %v612_v42 }
 0x399   :  { %4600 = vmatpush3.msra.mxu0 %v618_v41  ;;  %v4142_v41 = vld [vmem:[%s6305_s11 + $0x1] ss:$0 sm:$0xff] }
 0x39a   :  { %4595 = vmatpush3.msra.mxu1 %v613_v43  ;;  %4908 = vmatprep.subr.bf16.mxu0 %v4907_v11 }
 0x39b   :  { %4900 = vmatprep.subr.bf16.mxu1 %v4899_v15 }
 0x467   :  { %v770_v53 = vpop.f32.mrb[2].mxu0 }
 0x468   :  { %v775_v55 = vmul.f32 0.25, %v770_v53  ;;  %v694_v56 = vpop.f32.mrb[8].mxu1  ;;  %v4593_v57 = vpop.f32.mrb[3].mxu0  ;;  %v4150_v53 = vld [vmem:[%s6257_s13 + $0x1] ss:$0 sm:$0xff] }
 0x469   :  { %v774_v58 = vmul.f32 0.25, %v694_v56  ;;  %v4588_v26 = vpop.f32.mrb[9].mxu1 }
 0x46a   :  { %v789_v59 = vadd.f32 %v5522_v52, %v775_v55 }
 0x46b   :  { %v788_v60 = vadd.f32 %v5525_v54, %v774_v58 }
 0x46c   :  { %v794_v61 = vsel %vm790_vm11, %v789_v59, -inf }
 0x46d   :  { %795 = vmax.xlane.f32.xlu1 %v794_v61  ;;  %v791_v62 = vsel %vm790_vm11, %v788_v60, -inf }
 0x46e   :  { %792 = vmax.xlane.f32.xlu0 %v791_v62 }
 0x4fa   :  { %v796_v63 = vpop.xlane.xlu1 %795 }
 0x4fb   :  { %v798_v0 = vsub.f32 %v789_v59, %v796_v63  ;;  %v793_v1 = vpop.xlane.xlu0 %792 }
 0x4fc   :  { %v797_v2 = vsub.f32 %v788_v60, %v793_v1 }
 0x4fd   :  { %v801_v3 = vmul.f32 1.442695, %v798_v0 }
 0x4fe   :  { %v799_v4 = vmul.f32 1.442695, %v797_v2 }
 0x4ff   :  { %5131 = vpow2.f32 %v801_v3 }
 0x500   :  { %5133 = vpow2.f32 %v799_v4 }
 0x509   :  { %v5132_v5 = vpop.eup %5131 }
 0x50a   :  { %v5134_v6 = vpop.eup %5133  ;;  %v806_v7 = vsel %vm790_vm11, %v5132_v5, 0.0 }
 0x50b   :  { %807 = vadd.xlane.f32.xlu1 %v806_v7  ;;  %v803_v8 = vsel %vm790_vm11, %v5134_v6, 0.0 }
 0x50c   :  { %804 = vadd.xlane.f32.xlu0 %v803_v8 }
 0x598   :  { %v808_v16 = vpop.xlane.xlu1 %807 }
 0x599   :  { %5135 = vrcp.f32 %v808_v16  ;;  %v805_v17 = vpop.xlane.xlu0 %804 }
 0x59a   :  { %5137 = vrcp.f32 %v805_v17 }
 0x5a3   :  { %v5136_v21 = vpop.eup %5135 }
 0x5a4   :  { %v5138_v24 = vpop.eup %5137  ;;  %v812_v27 = vmul.f32 %v5136_v21, %v5132_v5 }
 0x5a5   :  { %v810_v28 = vmul.f32 %v5138_v24, %v5134_v6  ;;  %v4160_v24 = vld [vmem:[%s6258_s14 + $0x18] sm:$0xff] }
 0x5a6   :  { %4602 = vmatmul.mubr.msk.f32.vlgmr.msra.gmra.mrb[4].mxu0 %vm790_vm11, %v812_v27  ;;  %v4923_v27 = vpack.c.bf16 %v4160_v24, %v4159_v23  ;;  %v1885_v24 = vld [vmem:[%s6264_s20 + $0x30] sm:$0xff] }
 0x5a7   :  { %4910 = vmatpush3.bf16.msra.mxu0 %v4907_v11  ;;  %4597 = vmatmul.mubr.msk.f32.vlgmr.msra.gmra.mrb[10].mxu1 %vm790_vm11, %v810_v28  ;;  %v959_v28 = vld [vmem:[%s6258_s14] sm:$0xff] }
 0x5a8   :  { %4902 = vmatpush3.bf16.msra.mxu1 %v4899_v15  ;;  %4623 = vmatprep.mubr.msk.f32.mxu0 %vm307_vm8, %v5451_v14 }
 0x5a9   :  { %4612 = vmatprep.mubr.msk.f32.mxu1 %vm307_vm8, %v5451_v14  ;;  %4912 = vmatprep.subr.bf16.mxu0 %v4911_v29 }
 0x5aa   :  { %4904 = vmatprep.subr.bf16.mxu1 %v4903_v30 }
 0x5ab   :  { %4914 = vmatpush3.bf16.msra.mxu0 %v4911_v29  ;;  %v960_v29 = vld [vmem:[%s6258_s14 + $0x8] sm:$0xff] }
 0x5ac   :  { %4906 = vmatpush3.bf16.msra.mxu1 %v4903_v30  ;;  %4637 = vmatprep.subr.mxu0 %v5212_v25  ;;  %v4927_v30 = vpack.c.bf16 %v960_v29, %v959_v28  ;;  %v4168_v29 = vld [vmem:[%s6263_s19] ss:$0 sm:$0xff] }
 0x5ad   :  { %4916 = vmatprep.subr.bf16.mxu1 %v4915_v33 }
 0x5ae   :  { %4624 = vmatmul.mubr.msk.f32.vlgmr.msra.gmra.mrb[6].mxu0 %vm307_vm8, %v5461_v19 }
 0x5af   :  { %4613 = vmatmul.mubr.msk.f32.vlgmr.msra.gmra.mrb[12].mxu1 %vm307_vm8, %v5461_v19  ;;  %4639 = vmatprep.mubr.msk.f32.mxu0 %vm5213_vm9, %v5212_v25 }
 0x5b0   :  { %4918 = vmatpush3.bf16.msra.mxu1 %v4915_v33  ;;  %4634 = vmatprep.mubr.msk.f32.mxu1 %vm307_vm8, %v5451_v14 }
 0x5b1   :  { %4920 = vmatprep.subr.bf16.mxu1 %v4919_v36 }
 0x5b4   :  { %4922 = vmatpush3.bf16.msra.mxu1 %v4919_v36 }
 0x5b5   :  { %4647 = vmatprep.subr.mxu1 %v5212_v25 }
 0x5b7   :  { %4635 = vmatmul.mubr.msk.f32.vlgmr.msra.gmra.mrb[14].mxu1 %vm307_vm8, %v5461_v19 }
 0x5b8   :  { %4649 = vmatprep.mubr.msk.f32.mxu1 %vm5213_vm9, %v5212_v25 }
 0x679   :  { %v5589_v37 = vpop.f32.mrb[4].mxu0 }
 0x67a   :  { %v5591_v38 = vpop.f32.mrb[10].mxu1  ;;  %v4603_v39 = vpop.f32.mrb[5].mxu0 }
 0x67b   :  { %v4598_v40 = vpop.f32.mrb[11].mxu1 }
 0x681   :  { %v4625_v42 = vpop.f32.mrb[6].mxu0 }
 0x682   :  { %v4614_v43 = vpop.f32.mrb[12].mxu1  ;;  %v1128_v44 = vpop.f32.mrb[7].mxu0  ;;  %v1134_v51 = vadd.f32 %v4625_v42, %v4142_v41 }
 0x683   :  { %v1129_v47 = vadd.f32 %v4142_v41, %v1128_v44  ;;  %v1040_v48 = vpop.f32.mrb[13].mxu1  ;;  %v1046_v55 = vadd.f32 %v4614_v43, %v4134_v45 }
 0x684   :  { %v1041_v49 = vadd.f32 %v4134_v45, %v1040_v48 }
 0x685   :  { %4638 = vmatpush3.xpose.msk.msra.mxu0 %vm621_vm10, %v1129_v47 }
 0x686   :  { %4642 = vmatprep.subr.mxu0 %v5212_v25 }
 0x688   :  { %4640 = vmatmul.mubr.msk.f32.vlgmr.msra.gmra.mrb[8].mxu0 %vm621_vm10, %v1041_v49 }
 0x689   :  { %4643 = vmatpush3.xpose.msk.msra.mxu0 %vm621_vm10, %v1134_v51  ;;  %4644 = vmatprep.mubr.msk.f32.mxu0 %vm5213_vm9, %v5212_v25 }
 0x68a   :  { %v4636_v56 = vpop.f32.mrb[14].mxu1  ;;  %4652 = vmatprep.subr.mxu0 %v5212_v25 }
 0x68b   :  { %v1222_v57 = vadd.f32 %v4636_v56, %v4150_v53  ;;  %v1216_v58 = vpop.f32.mrb[15].mxu1 }
 0x68c   :  { %v1217_v26 = vadd.f32 %v4150_v53, %v1216_v58  ;;  %4645 = vmatmul.mubr.msk.f32.vlgmr.msra.gmra.mrb[10].mxu0 %vm621_vm10, %v1046_v55 }
 0x68d   :  { %4653 = vmatpush3.msra.mxu0 %v1222_v57  ;;  %4654 = vmatprep.mubr.msk.f32.mxu0 %vm5213_vm9, %v5212_v25  ;;  %v1770_v57 = vld [vmem:[%s6262_s18 + $0x8] sm:$0xff] }
 0x68e   :  { %4648 = vmatpush3.msra.mxu1 %v1217_v26  ;;  %v1771_v26 = vld [vmem:[%s6262_s18 + $0x10] sm:$0xff] }
 0x68f   :  { %4924 = vmatprep.subr.bf16.mxu1 %v4923_v27 }
 0x75b   :  { %v1297_v59 = vpop.f32.mrb[8].mxu0 }
 0x75c   :  { %v1377_v60 = vmul.f32 0.25, %v1297_v59  ;;  %v4641_v61 = vpop.f32.mrb[9].mxu0  ;;  %v1772_v59 = vld [vmem:[%s6262_s18 + $0x18] sm:$0xff] }
 0x75e   :  { %v1379_v62 = vadd.f32 %v1377_v60, %v5525_v54  ;;  %v4935_v60 = vpack.c.bf16 %v1772_v59, %v1771_v26 }
 0x75f   :  { %v1373_v63 = vpop.f32.mrb[10].mxu0 }
 0x760   :  { %v1378_v0 = vmul.f32 0.25, %v1373_v63  ;;  %v4646_v1 = vpop.f32.mrb[11].mxu0  ;;  %v1381_v2 = vsel %vm790_vm11, %v1379_v62, -inf }
 0x761   :  { %1382 = vmax.xlane.f32.xlu1 %v1381_v2 }
 0x762   :  { %v1380_v3 = vadd.f32 %v1378_v0, %v5522_v52 }
 0x764   :  { %v1384_v4 = vsel %vm790_vm11, %v1380_v3, -inf }
 0x765   :  { %1385 = vmax.xlane.f32.xlu0 %v1384_v4  ;;  %v4166_v4 = vld [vmem:[%s6260_s16] ss:$0 sm:$0xff] }
 0x7ee   :  { %v1383_v5 = vpop.xlane.xlu1 %1382 }
 0x7ef   :  { %v1387_v6 = vsub.f32 %v1379_v62, %v1383_v5 }
 0x7f1   :  { %v1389_v7 = vmul.f32 1.442695, %v1387_v6 }
 0x7f2   :  { %v1386_v8 = vpop.xlane.xlu0 %1385 }
 0x7f3   :  { %5139 = vpow2.f32 %v1389_v7  ;;  %v1388_v9 = vsub.f32 %v1380_v3, %v1386_v8  ;;  %v4167_v8 = vld [vmem:[%s6261_s17] ss:$0 sm:$0xff] }
 0x7f5   :  { %v1391_v10 = vmul.f32 1.442695, %v1388_v9 }
 0x7f7   :  { %5141 = vpow2.f32 %v1391_v10 }
 0x7fd   :  { %v5140_v11 = vpop.eup %5139 }
 0x7fe   :  { %v1393_v12 = vsel %vm790_vm11, %v5140_v11, 0.0 }
 0x7ff   :  { %1394 = vadd.xlane.f32.xlu1 %v1393_v12 }
 0x801   :  { %v5142_v13 = vpop.eup %5141 }
 0x802   :  { %v1396_v15 = vsel %vm790_vm11, %v5142_v13, 0.0 }
 0x803   :  { %1397 = vadd.xlane.f32.xlu0 %v1396_v15  ;;  %v1880_v15 = vld [vmem:[%s6264_s20 + $0x8] sm:$0xff] }
 0x88c   :  { %v1395_v16 = vpop.xlane.xlu1 %1394 }
 0x88d   :  { %5143 = vrcp.f32 %v1395_v16 }
 0x890   :  { %v1398_v17 = vpop.xlane.xlu0 %1397 }
 0x891   :  { %5145 = vrcp.f32 %v1398_v17  ;;  %v1881_v17 = vld [vmem:[%s6264_s20 + $0x10] sm:$0xff] }
 0x897   :  { %v5144_v18 = vpop.eup %5143 }
 0x898   :  { %v1400_v20 = vmul.f32 %v5144_v18, %v5140_v11  ;;  %v1882_v18 = vld [vmem:[%s6264_s20 + $0x18] sm:$0xff] }
 0x89a   :  { %4650 = vmatmul.mubr.msk.f32.vlgmr.msra.gmra.mrb[16].mxu1 %vm790_vm11, %v1400_v20  ;;  %v4943_v20 = vpack.c.bf16 %v1882_v18, %v1881_v17  ;;  %v4194_v18 = vld [vmem:[%s6304_s12 + $0x50] sm:$0xff] }
 0x89b   :  { %v5146_v21 = vpop.eup %5145  ;;  %4926 = vmatpush3.bf16.msra.mxu1 %v4923_v27  ;;  %v1886_v27 = vld [vmem:[%s6264_s20 + $0x38] sm:$0xff] }
 0x89c   :  { %v1402_v22 = vmul.f32 %v5146_v21, %v5142_v13  ;;  %4928 = vmatprep.subr.bf16.mxu1 %v4927_v30  ;;  %v1879_v13 = vld [vmem:[%s6264_s20] sm:$0xff]  ;;  %v4951_v28 = vpack.c.bf16 %v1886_v27, %v1885_v24 }
 0x89d   :  { %v4939_v16 = vpack.c.bf16 %v1880_v15, %v1879_v13  ;;  %v1883_v21 = vld [vmem:[%s6264_s20 + $0x20] sm:$0xff]  ;;  %v4178_v15 = vld [vmem:[%s6300_s5 + $0x50] sm:$0xff] }
 0x89e   :  { %4655 = vmatmul.mubr.msk.f32.vlgmr.msra.gmra.mrb[12].mxu0 %vm790_vm11, %v1402_v22  ;;  %v1884_v22 = vld [vmem:[%s6264_s20 + $0x28] sm:$0xff] }
 0x89f   :  { %v4947_v23 = vpack.c.bf16 %v1884_v22, %v1883_v21  ;;  %v4184_v22 = vld [vmem:[%s6301_s7 + $0x40] sm:$0xff] }
 0x96d   :  { %v1472_v31 = vpop.f32.mrb[16].mxu1 }
 0x96e   :  { %v4651_v32 = vpop.f32.mrb[17].mxu1  ;;  %4661 = vmatprep.mubr.msk.f32.mxu1 %vm621_vm10, %v1472_v31 }
 0x971   :  { %v1545_v33 = vpop.f32.mrb[12].mxu0 }
 0x972   :  { %v4656_v34 = vpop.f32.mrb[13].mxu0  ;;  %4662 = vmatmul.mubr.msk.f32.vlgmr.msra.gmra.mrb[18].mxu1 %vm621_vm10, %v1545_v33 }
 0x973   :  { %4930 = vmatpush3.bf16.msra.mxu1 %v4927_v30  ;;  %4668 = vmatprep.mubr.msk.f32.mxu1 %vm621_vm10, %v5591_v38 }
 0x974   :  { %4940 = vmatprep.subr.bf16.mxu1 %v4939_v16 }
 0x97a   :  { %4669 = vmatmul.mubr.msk.f32.vlgmr.msra.gmra.mrb[18].mxu1 %vm621_vm10, %v5589_v37 }
 0x97b   :  { %4942 = vmatpush3.bf16.msra.mxu1 %v4939_v16  ;;  %v4179_v16 = vld [vmem:[%s6300_s5 + $0x58] sm:$0xff] }
 0x97c   :  { %4944 = vmatprep.subr.bf16.mxu1 %v4943_v20  ;;  %v4959_v17 = vpack.c.bf16 %v4179_v16, %v4178_v15 }
 0x97f   :  { %4946 = vmatpush3.bf16.msra.mxu1 %v4943_v20  ;;  %v4195_v20 = vld [vmem:[%s6304_s12 + $0x58] sm:$0xff] }
 0x980   :  { %4948 = vmatprep.subr.bf16.mxu1 %v4947_v23  ;;  %v4975_v21 = vpack.c.bf16 %v4195_v20, %v4194_v18  ;;  %v4208_v20 = vld [vmem:[%s6300_s5 + $0x60] sm:$0xff] }
 0x983   :  { %4950 = vmatpush3.bf16.msra.mxu1 %v4947_v23  ;;  %v4185_v23 = vld [vmem:[%s6301_s7 + $0x48] sm:$0xff] }
 0x984   :  { %4952 = vmatprep.subr.bf16.mxu1 %v4951_v28  ;;  %v4963_v24 = vpack.c.bf16 %v4185_v23, %v4184_v22  ;;  %v4216_v23 = vld [vmem:[%s6301_s7 + $0x60] sm:$0xff] }
 0x987   :  { %4954 = vmatpush3.bf16.msra.mxu1 %v4951_v28 }
 0xa4d   :  { %v4670_v36 = vpop.f32.mrb[18].mxu1 }
 0xa4e   :  { %v1722_v39 = vadd.f32 %v4670_v36, %v4165_v35  ;;  %v1705_v40 = vpop.f32.mrb[19].mxu1 }
 0xa4f   :  { %v1721_v41 = vadd.f32 %v4165_v35, %v1705_v40 }
 0xa50   :  { %v1724_v42 = vadd.f32 %v1722_v39, %v5461_v19 }
 0xa51   :  { %v1723_v43 = vadd.f32 %v1721_v41, %v5451_v14  ;;  %v1769_v14 = vld [vmem:[%s6262_s18] sm:$0xff] }
 0xa52   :  { %v1730_v44 = vsel %vm307_vm8, %v1724_v42, 0.0  ;;  %v4931_v58 = vpack.c.bf16 %v1770_v57, %v1769_v14 }
 0xa53   :  { %1731 = vadd.xlane.f32.xlu0 %v1730_v44  ;;  %v1727_v38 = vsel %vm307_vm8, %v1723_v43, 0.0 }
 0xa54   :  { %1728 = vadd.xlane.f32.xlu1 %v1727_v38  ;;  %4932 = vmatprep.subr.bf16.mxu0 %v4931_v58 }
 0xa55   :  { %4934 = vmatpush3.bf16.msra.mxu0 %v4931_v58 }
 0xa56   :  { %4936 = vmatprep.subr.bf16.mxu0 %v4935_v60 }
 0xa59   :  { %4938 = vmatpush3.bf16.msra.mxu0 %v4935_v60 }
 0xae0   :  { %v1732_v45 = vpop.xlane.xlu0 %1731 }
 0xae1   :  { %v1734_v37 = vmul.f32 0.03125, %v1732_v45  ;;  %v1729_v47 = vpop.xlane.xlu1 %1728 }
 0xae2   :  { %v1733_v48 = vmul.f32 0.03125, %v1729_v47 }
 0xae3   :  { %v1736_v49 = vsub.f32 %v1724_v42, %v1734_v37 }
 0xae4   :  { %v1735_v51 = vsub.f32 %v1723_v43, %v1733_v48 }
 0xae5   :  { %v1738_v53 = vmul.f32 %v1736_v49, %v1736_v49 }
 0xae6   :  { %v1737_v55 = vmul.f32 %v1735_v51, %v1735_v51 }
 0xae7   :  { %v1742_v56 = vsel %vm307_vm8, %v1738_v53, 0.0 }
 0xae8   :  { %1743 = vadd.xlane.f32.xlu0 %v1742_v56  ;;  %v1739_v19 = vsel %vm307_vm8, %v1737_v55, 0.0  ;;  %v4171_v56 = vld [vmem:[%s6265_s21] ss:$0 sm:$0xff] }
 0xae9   :  { %1740 = vadd.xlane.f32.xlu1 %v1739_v19 }
 0xb75   :  { %v1744_v61 = vpop.xlane.xlu0 %1743 }
 0xb76   :  { %v1746_v62 = vmul.f32 0.03125, %v1744_v61  ;;  %v1741_v63 = vpop.xlane.xlu1 %1740 }
 0xb77   :  { %v1745_v0 = vmul.f32 0.03125, %v1741_v63 }
 0xb78   :  { %v1748_v1 = vadd.f32 1e-12, %v1746_v62 }
 0xb79   :  { %v1747_v2 = vadd.f32 1e-12, %v1745_v0 }
 0xb7a   :  { %5147 = vrsqrt.f32 %v1748_v1 }
 0xb7b   :  { %5149 = vrsqrt.f32 %v1747_v2 }
 0xb84   :  { %v5148_v3 = vpop.eup %5147 }
 0xb85   :  { %v5150_v5 = vpop.eup %5149  ;;  %v1752_v6 = vmul.f32 %v5148_v3, %v1736_v49 }
 0xb86   :  { %v1751_v7 = vmul.f32 %v5150_v5, %v1735_v51 }
 0xb87   :  { %v1760_v9 = vmul.f32 %v4166_v4, %v1752_v6 }
 0xb88   :  { %v1759_v10 = vmul.f32 %v4166_v4, %v1751_v7 }
 0xb89   :  { %v1768_v12 = vadd.f32 %v4167_v8, %v1760_v9  ;;  %v4177_v9 = vld [vmem:[%s6300_s5 + $0x48] sm:$0xff] }
 0xb8a   :  { %v1767_v11 = vadd.f32 %v4167_v8, %v1759_v10  ;;  %v4176_v8 = vld [vmem:[%s6300_s5 + $0x40] sm:$0xff] }
 0xb8b   :  { %v4955_v10 = vpack.c.bf16 %v4177_v9, %v4176_v8 }
 0xb8c   :  { %4679 = vmatprep.mubr.msk.f32.mxu0 %vm307_vm8, %v1767_v11 }
 0xb8d   :  { %4680 = vmatmul.mubr.msk.f32.vlgmr.msra.gmra.mrb[14].mxu0 %vm307_vm8, %v1768_v12  ;;  %4956 = vmatprep.subr.bf16.mxu0 %v4955_v10 }
 0xb8e   :  { %4958 = vmatpush3.bf16.msra.mxu0 %v4955_v10 }
 0xb8f   :  { %4960 = vmatprep.subr.bf16.mxu0 %v4959_v17 }
 0xb92   :  { %4962 = vmatpush3.bf16.msra.mxu0 %v4959_v17 }
 0xb93   :  { %4964 = vmatprep.subr.bf16.mxu0 %v4963_v24 }
 0xc60   :  { %v4681_v30 = vpop.f32.mrb[14].mxu0 }
 0xc61   :  { %v1858_v31 = vadd.f32 %v4681_v30, %v4168_v29  ;;  %v1852_v32 = vpop.f32.mrb[15].mxu0 }
 0xc62   :  { %v1853_v33 = vadd.f32 %v4168_v29, %v1852_v32 }
 0xc63   :  { %v1862_v34 = vmul.f32 %v1858_v31, %v1858_v31 }
 0xc64   :  { %v1861_v35 = vmul.f32 %v1853_v33, %v1853_v33 }
 0xc65   :  { %v1864_v36 = vmul.f32 %v1862_v34, %v1858_v31  ;;  %v4174_v34 = vld [vmem:[%s6266_s22] ss:$0 sm:$0xff] }
 0xc66   :  { %v1863_v39 = vmul.f32 %v1861_v35, %v1853_v33 }
 0xc67   :  { %v1866_v40 = vmul.f32 0.044715, %v1864_v36 }
 0xc68   :  { %v1865_v41 = vmul.f32 0.044715, %v1863_v39 }
 0xc69   :  { %v1868_v42 = vadd.f32 %v1866_v40, %v1858_v31  ;;  %v4175_v40 = vld [vmem:[%s6267_s23] ss:$0 sm:$0xff] }
 0xc6a   :  { %v1867_v43 = vadd.f32 %v1865_v41, %v1853_v33 }
 0xc6b   :  { %v1870_v44 = vmul.f32 0.7978846, %v1868_v42 }
 0xc6c   :  { %v1869_v38 = vmul.f32 0.7978846, %v1867_v43  ;;  %v4186_v43 = vld [vmem:[%s6301_s7 + $0x50] sm:$0xff] }
 0xc6d   :  { %5151 = vtanh.f32 %v1870_v44  ;;  %v4187_v44 = vld [vmem:[%s6301_s7 + $0x58] sm:$0xff] }
 0xc6e   :  { %5153 = vtanh.f32 %v1869_v38 }
 0xc77   :  { %v5152_v45 = vpop.eup %5151 }
 0xc78   :  { %v5154_v37 = vpop.eup %5153  ;;  %v1874_v47 = vadd.f32 1.0, %v5152_v45 }
 0xc79   :  { %v1873_v48 = vadd.f32 1.0, %v5154_v37  ;;  %v4967_v37 = vpack.c.bf16 %v4187_v44, %v4186_v43 }
 0xc7a   :  { %v1876_v49 = vmul.f32 0.5, %v1874_v47  ;;  %v4197_v47 = vld [vmem:[%s6257_s13 + $0x2] ss:$0 sm:$0xff] }
 0xc7b   :  { %v1875_v51 = vmul.f32 0.5, %v1873_v48 }
 0xc7c   :  { %v1878_v55 = vmul.f32 %v1876_v49, %v1858_v31 }
 0xc7d   :  { %v1877_v53 = vmul.f32 %v1875_v51, %v1853_v33 }
 0xc7f   :  { %4698 = vmatprep.mubr.msk.f32.mxu1 %vm1894_vm12, %v1877_v53 }
 0xc80   :  { %4699 = vmatmul.mubr.msk.f32.vlgmr.msra.gmra.mrb[20].mxu1 %vm1894_vm12, %v1878_v55 }
 0xd53   :  { %v4700_v19 = vpop.f32.mrb[20].mxu1 }
 0xd54   :  { %v1973_v14 = vadd.f32 %v4700_v19, %v4171_v56  ;;  %v1967_v57 = vpop.f32.mrb[21].mxu1 }
 0xd55   :  { %v1968_v58 = vadd.f32 %v4171_v56, %v1967_v57  ;;  %v4189_v56 = vld [vmem:[%s6305_s11 + $0x2] ss:$0 sm:$0xff] }
 0xd56   :  { %v1977_v26 = vadd.f32 %v1973_v14, %v1768_v12  ;;  %v4193_v12 = vld [vmem:[%s6304_s12 + $0x48] sm:$0xff]  ;;  %v4181_v57 = vld [vmem:[%s6306_s0 + $0x2] ss:$0 sm:$0xff] }
 0xd57   :  { %v1976_v59 = vadd.f32 %v1968_v58, %v1767_v11  ;;  %v4192_v11 = vld [vmem:[%s6304_s12 + $0x40] sm:$0xff] }
 0xd58   :  { %v1983_v60 = vsel %vm307_vm8, %v1977_v26, 0.0  ;;  %v4971_v13 = vpack.c.bf16 %v4193_v12, %v4192_v11 }
 0xd59   :  { %1984 = vadd.xlane.f32.xlu0 %v1983_v60  ;;  %v1980_v61 = vsel %vm307_vm8, %v1976_v59, 0.0 }
 0xd5a   :  { %1981 = vadd.xlane.f32.xlu1 %v1980_v61  ;;  %4972 = vmatprep.subr.bf16.mxu1 %v4971_v13 }
 0xd5b   :  { %4974 = vmatpush3.bf16.msra.mxu1 %v4971_v13 }
 0xd5c   :  { %4976 = vmatprep.subr.bf16.mxu1 %v4975_v21 }
 0xd5f   :  { %4978 = vmatpush3.bf16.msra.mxu1 %v4975_v21  ;;  %v4209_v21 = vld [vmem:[%s6300_s5 + $0x68] sm:$0xff] }
 0xd60   :  { %4744 = vmatprep.subr.mxu1 %v5212_v25  ;;  %v4979_v22 = vpack.c.bf16 %v4209_v21, %v4208_v20 }
 0xde6   :  { %v1985_v62 = vpop.xlane.xlu0 %1984 }
 0xde7   :  { %v1987_v63 = vmul.f32 0.03125, %v1985_v62  ;;  %v1982_v0 = vpop.xlane.xlu1 %1981 }
 0xde8   :  { %v1986_v1 = vmul.f32 0.03125, %v1982_v0 }
 0xde9   :  { %v1989_v2 = vsub.f32 %v1977_v26, %v1987_v63 }
 0xdea   :  { %v1988_v3 = vsub.f32 %v1976_v59, %v1986_v1 }
 0xdeb   :  { %v1991_v4 = vmul.f32 %v1989_v2, %v1989_v2 }
 0xdec   :  { %v1990_v5 = vmul.f32 %v1988_v3, %v1988_v3 }
 0xded   :  { %v1995_v6 = vsel %vm307_vm8, %v1991_v4, 0.0 }
 0xdee   :  { %1996 = vadd.xlane.f32.xlu0 %v1995_v6  ;;  %v1992_v7 = vsel %vm307_vm8, %v1990_v5, 0.0 }
 0xdef   :  { %1993 = vadd.xlane.f32.xlu1 %v1992_v7 }
 0xe7b   :  { %v1997_v27 = vpop.xlane.xlu0 %1996 }
 0xe7c   :  { %v1999_v28 = vmul.f32 0.03125, %v1997_v27  ;;  %v1994_v29 = vpop.xlane.xlu1 %1993 }
 0xe7d   :  { %v1998_v30 = vmul.f32 0.03125, %v1994_v29 }
 0xe7e   :  { %v2001_v31 = vadd.f32 1e-12, %v1999_v28 }
 0xe7f   :  { %v2000_v32 = vadd.f32 1e-12, %v1998_v30  ;;  %v4210_v30 = vld [vmem:[%s6300_s5 + $0x70] sm:$0xff] }
 0xe80   :  { %5155 = vrsqrt.f32 %v2001_v31  ;;  %v4211_v31 = vld [vmem:[%s6300_s5 + $0x78] sm:$0xff] }
 0xe81   :  { %5157 = vrsqrt.f32 %v2000_v32 }
 0xe8a   :  { %v5156_v33 = vpop.eup %5155 }
 0xe8b   :  { %v5158_v35 = vpop.eup %5157  ;;  %v2005_v36 = vmul.f32 %v5156_v33, %v1989_v2 }
 0xe8c   :  { %v2004_v39 = vmul.f32 %v5158_v35, %v1988_v3  ;;  %v4218_v35 = vld [vmem:[%s6301_s7 + $0x70] sm:$0xff] }
 0xe8d   :  { %v2013_v41 = vmul.f32 %v4174_v34, %v2005_v36  ;;  %v4219_v36 = vld [vmem:[%s6301_s7 + $0x78] sm:$0xff] }
 0xe8e   :  { %v2012_v42 = vmul.f32 %v4174_v34, %v2004_v39  ;;  %v4983_v34 = vpack.c.bf16 %v4211_v31, %v4210_v30  ;;  %v4224_v39 = vld [vmem:[%s6304_s12 + $0x60] sm:$0xff]  ;;  %v4991_v43 = vpack.c.bf16 %v4219_v36, %v4218_v35  ;;  %v4207_v36 = vld [vmem:[%s6258_s14 + $0x28] sm:$0xff] }
 0xe8f   :  { %v5748_v45 = vadd.f32 %v4175_v40, %v2013_v41  ;;  %v4206_v35 = vld [vmem:[%s6258_s14 + $0x20] sm:$0xff] }
 0xe90   :  { %v5746_v38 = vadd.f32 %v4175_v40, %v2012_v42  ;;  %v4225_v40 = vld [vmem:[%s6304_s12 + $0x68] sm:$0xff] }
 0xe91   :  { %v4995_v44 = vpack.c.bf16 %v4225_v40, %v4224_v39  ;;  %v5007_v39 = vpack.c.bf16 %v4207_v36, %v4206_v35 }
 0xe92   :  { %4709 = vmatprep.mubr.msk.f32.mxu0 %vm307_vm8, %v5746_v38  ;;  %4731 = vmatprep.mubr.msk.f32.mxu1 %vm307_vm8, %v5746_v38 }
 0xe93   :  { %4710 = vmatmul.mubr.msk.f32.vlgmr.msra.gmra.mrb[16].mxu0 %vm307_vm8, %v5748_v45  ;;  %4732 = vmatmul.mubr.msk.f32.vlgmr.msra.gmra.mrb[22].mxu1 %vm307_vm8, %v5748_v45 }
 0xe94   :  { %4966 = vmatpush3.bf16.msra.mxu0 %v4963_v24  ;;  %4720 = vmatprep.mubr.msk.f32.mxu0 %vm307_vm8, %v5746_v38  ;;  %v4217_v24 = vld [vmem:[%s6301_s7 + $0x68] sm:$0xff] }
 0xe95   :  { %4968 = vmatprep.subr.bf16.mxu0 %v4967_v37  ;;  %4746 = vmatprep.mubr.msk.f32.mxu1 %vm5213_vm9, %v5212_v25  ;;  %v4987_v27 = vpack.c.bf16 %v4217_v24, %v4216_v23 }
 0xe98   :  { %4970 = vmatpush3.bf16.msra.mxu0 %v4967_v37  ;;  %v4226_v37 = vld [vmem:[%s6304_s12 + $0x70] sm:$0xff] }
 0xe99   :  { %4734 = vmatprep.subr.mxu0 %v5212_v25 }
 0xe9b   :  { %4721 = vmatmul.mubr.msk.f32.vlgmr.msra.gmra.mrb[18].mxu0 %vm307_vm8, %v5748_v45 }
 0xe9c   :  { %4736 = vmatprep.mubr.msk.f32.mxu0 %vm5213_vm9, %v5212_v25 }
 0xf66   :  { %v4711_v48 = vpop.f32.mrb[16].mxu0  ;;  %v4733_v49 = vpop.f32.mrb[22].mxu1 }
 0xf67   :  { %v2107_v51 = vpop.f32.mrb[17].mxu0  ;;  %v2283_v53 = vpop.f32.mrb[23].mxu1  ;;  %v2113_v60 = vadd.f32 %v4711_v48, %v4181_v57  ;;  %v2289_v61 = vadd.f32 %v4733_v49, %v4197_v47 }
 0xf68   :  { %v2284_v55 = vadd.f32 %v4197_v47, %v2283_v53  ;;  %v2108_v26 = vadd.f32 %v4181_v57, %v2107_v51  ;;  %v4227_v47 = vld [vmem:[%s6304_s12 + $0x78] sm:$0xff] }
 0xf69   :  { %v4999_v48 = vpack.c.bf16 %v4227_v47, %v4226_v37 }
 0xf6a   :  { %4745 = vmatpush3.msra.mxu1 %v2284_v55 }
 0xf6b   :  { %4980 = vmatprep.subr.bf16.mxu1 %v4979_v22 }
 0xf6e   :  { %v4722_v19 = vpop.f32.mrb[18].mxu0 }
 0xf6f   :  { %v2195_v14 = vpop.f32.mrb[19].mxu0  ;;  %v2201_v59 = vadd.f32 %v4722_v19, %v4189_v56 }
 0xf70   :  { %v2196_v58 = vadd.f32 %v4189_v56, %v2195_v14  ;;  %v4221_v14 = vld [vmem:[%s6305_s11 + $0x3] ss:$0 sm:$0xff] }
 0xf72   :  { %4735 = vmatpush3.xpose.msk.msra.mxu0 %vm621_vm10, %v2196_v58 }
 0xf73   :  { %4739 = vmatprep.subr.mxu0 %v5212_v25 }
 0xf75   :  { %4737 = vmatmul.mubr.msk.f32.vlgmr.msra.gmra.mrb[20].mxu0 %vm621_vm10, %v2108_v26  ;;  %v4213_v26 = vld [vmem:[%s6306_s0 + $0x3] ss:$0 sm:$0xff] }
 0xf76   :  { %4740 = vmatpush3.xpose.msk.msra.mxu0 %vm621_vm10, %v2201_v59  ;;  %4741 = vmatprep.mubr.msk.f32.mxu0 %vm5213_vm9, %v5212_v25 }
 0xf77   :  { %4749 = vmatprep.subr.mxu0 %v5212_v25 }
 0xf79   :  { %4742 = vmatmul.mubr.msk.f32.vlgmr.msra.gmra.mrb[22].mxu0 %vm621_vm10, %v2113_v60  ;;  %v4229_v60 = vld [vmem:[%s6257_s13 + $0x3] ss:$0 sm:$0xff] }
 0xf7a   :  { %4750 = vmatpush3.msra.mxu0 %v2289_v61  ;;  %4751 = vmatprep.mubr.msk.f32.mxu0 %vm5213_vm9, %v5212_v25 }
 0xf7b   :  { %4988 = vmatprep.subr.bf16.mxu0 %v4987_v27 }
0x1048   :  { %v2364_v62 = vpop.f32.mrb[20].mxu0 }
0x1049   :  { %v2444_v63 = vmul.f32 0.25, %v2364_v62  ;;  %v4738_v0 = vpop.f32.mrb[21].mxu0 }
0x104b   :  { %v2446_v1 = vadd.f32 %v2444_v63, %v5525_v54 }
0x104c   :  { %v2440_v2 = vpop.f32.mrb[22].mxu0 }
0x104d   :  { %v2445_v3 = vmul.f32 0.25, %v2440_v2  ;;  %v4743_v4 = vpop.f32.mrb[23].mxu0  ;;  %v2448_v5 = vsel %vm790_vm11, %v2446_v1, -inf }
0x104e   :  { %2449 = vmax.xlane.f32.xlu0 %v2448_v5 }
0x104f   :  { %v2447_v6 = vadd.f32 %v2445_v3, %v5522_v52 }
0x1051   :  { %v2451_v7 = vsel %vm790_vm11, %v2447_v6, -inf }
0x1052   :  { %2452 = vmax.xlane.f32.xlu1 %v2451_v7 }
0x10db   :  { %v2450_v8 = vpop.xlane.xlu0 %2449 }
0x10dc   :  { %v2454_v9 = vsub.f32 %v2446_v1, %v2450_v8 }
0x10de   :  { %v2456_v10 = vmul.f32 1.442695, %v2454_v9 }
0x10df   :  { %v2453_v11 = vpop.xlane.xlu1 %2452 }
0x10e0   :  { %5159 = vpow2.f32 %v2456_v10  ;;  %v2455_v12 = vsub.f32 %v2447_v6, %v2453_v11 }
0x10e2   :  { %v2458_v13 = vmul.f32 1.442695, %v2455_v12 }
0x10e4   :  { %5161 = vpow2.f32 %v2458_v13 }
0x10ea   :  { %v5160_v15 = vpop.eup %5159 }
0x10eb   :  { %v2460_v16 = vsel %vm790_vm11, %v5160_v15, 0.0 }
0x10ec   :  { %2461 = vadd.xlane.f32.xlu0 %v2460_v16 }
0x10ee   :  { %v5162_v17 = vpop.eup %5161 }
0x10ef   :  { %v2463_v18 = vsel %vm790_vm11, %v5162_v17, 0.0 }
0x10f0   :  { %2464 = vadd.xlane.f32.xlu1 %v2463_v18 }
0x1179   :  { %v2462_v28 = vpop.xlane.xlu0 %2461 }
0x117a   :  { %5163 = vrcp.f32 %v2462_v28 }
0x117d   :  { %v2465_v29 = vpop.xlane.xlu1 %2464 }
0x117e   :  { %5165 = vrcp.f32 %v2465_v29 }
0x1184   :  { %v5164_v32 = vpop.eup %5163 }
0x1185   :  { %v2467_v33 = vmul.f32 %v5164_v32, %v5160_v15  ;;  %v4238_v32 = vld [vmem:[%s6258_s14 + $0x30] sm:$0xff] }
0x1187   :  { %4747 = vmatmul.mubr.msk.f32.vlgmr.msra.gmra.mrb[24].mxu1 %vm790_vm11, %v2467_v33  ;;  %v4239_v33 = vld [vmem:[%s6258_s14 + $0x38] sm:$0xff]  ;;  %s5187_s14 = scalar_lea.vmem %s4099_s30, 32 }
0x1188   :  { %v5166_v41 = vpop.eup %5165  ;;  %4982 = vmatpush3.bf16.msra.mxu1 %v4979_v22  ;;  %4762 = vmatprep.mubr.msk.f32.mxu1 %vm307_vm8, %v5746_v38  ;;  %p5188_p0 = scmp.ne.s32.totalorder %s4099_s30, %s5187_s14  ;;  %p5193_p2 = scmp.lt.s32.totalorder %s5187_s14, %s5187_s14 }
0x1189   :  { %v2469_v42 = vmul.f32 %v5166_v41, %v5162_v17  ;;  %4984 = vmatprep.subr.bf16.mxu1 %v4983_v34 }
0x118a   :  { %p5194_p3 = por %p5193_p2, %p5192_p1 }
0x118b   :  { %4752 = vmatmul.mubr.msk.f32.vlgmr.msra.gmra.mrb[24].mxu0 %vm790_vm11, %v2469_v42 }
0x118c   :  { %4986 = vmatpush3.bf16.msra.mxu1 %v4983_v34  ;;  %4990 = vmatpush3.bf16.msra.mxu0 %v4987_v27  ;;  %v5003_v34 = vpack.c.bf16 %v4239_v33, %v4238_v32  ;;  %v4265_v32 = vld [vmem:[%s6264_s20 + $0x78] sm:$0xff]  ;;  %p5195_p4 = pnand %p5194_p3, %p5188_p0 }
0x118d   :  { %4773 = vmatprep.mubr.msk.f32.mxu0 %vm307_vm8, %v5746_v38  ;;  %4992 = vmatprep.subr.bf16.mxu0 %v4991_v43 }
0x118e   :  { %4996 = vmatprep.subr.bf16.mxu1 %v4995_v44 }
0x118f   :  { %4763 = vmatmul.mubr.msk.f32.vlgmr.msra.gmra.mrb[26].mxu1 %vm307_vm8, %v5748_v45 }
0x1190   :  { %4994 = vmatpush3.bf16.msra.mxu0 %v4991_v43  ;;  %4998 = vmatpush3.bf16.msra.mxu1 %v4995_v44  ;;  %v4245_v44 = vld [vmem:[%s6259_s15 + $0x1] ss:$0 sm:$0xff] }
0x1191   :  { %4784 = vmatprep.mubr.msk.f32.mxu1 %vm307_vm8, %v5746_v38  ;;  %5000 = vmatprep.subr.bf16.mxu1 %v4999_v48 }
0x1192   :  { %4787 = vmatprep.subr.mxu0 %v5212_v25 }
0x1193   :  { %4774 = vmatmul.mubr.msk.f32.vlgmr.msra.gmra.mrb[26].mxu0 %vm307_vm8, %v5748_v45 }
0x1194   :  { %5002 = vmatpush3.bf16.msra.mxu1 %v4999_v48  ;;  %4789 = vmatprep.mubr.msk.f32.mxu0 %vm5213_vm9, %v5212_v25 }
0x1195   :  { %4797 = vmatprep.subr.mxu1 %v5212_v25 }
0x1197   :  { %4785 = vmatmul.mubr.msk.f32.vlgmr.msra.gmra.mrb[28].mxu1 %vm307_vm8, %v5748_v45 }
0x1198   :  { %4799 = vmatprep.mubr.msk.f32.mxu1 %vm5213_vm9, %v5212_v25 }
0x125a   :  { %v5848_v49 = vpop.f32.mrb[24].mxu1 }
0x125b   :  { %v4748_v51 = vpop.f32.mrb[25].mxu1 }
0x125e   :  { %v5850_v53 = vpop.f32.mrb[24].mxu0 }
0x125f   :  { %v4753_v55 = vpop.f32.mrb[25].mxu0 }
0x1262   :  { %v4764_v56 = vpop.f32.mrb[26].mxu1 }
0x1263   :  { %v2698_v19 = vpop.f32.mrb[27].mxu1  ;;  %v2704_v2 = vadd.f32 %v4764_v56, %v4213_v26 }
0x1264   :  { %v2699_v62 = vadd.f32 %v4213_v26, %v2698_v19 }
0x1266   :  { %v4775_v57 = vpop.f32.mrb[26].mxu0 }
0x1267   :  { %v2786_v58 = vpop.f32.mrb[27].mxu0  ;;  %v2792_v0 = vadd.f32 %v4775_v57, %v4221_v14 }
0x1268   :  { %v2787_v59 = vadd.f32 %v4221_v14, %v2786_v58 }
0x126a   :  { %v4786_v61 = vpop.f32.mrb[28].mxu1  ;;  %4788 = vmatpush3.xpose.msk.msra.mxu0 %vm621_vm10, %v2787_v59 }
0x126b   :  { %v2874_v63 = vpop.f32.mrb[29].mxu1  ;;  %4792 = vmatprep.subr.mxu0 %v5212_v25  ;;  %v2880_v3 = vadd.f32 %v4786_v61, %v4229_v60 }
0x126c   :  { %v2875_v1 = vadd.f32 %v4229_v60, %v2874_v63  ;;  %v4251_v63 = vld [vmem:[%s6262_s18 + $0x28] sm:$0xff] }
0x126d   :  { %4790 = vmatmul.mubr.msk.f32.vlgmr.msra.gmra.mrb[28].mxu0 %vm621_vm10, %v2699_v62 }
0x126e   :  { %4793 = vmatpush3.xpose.msk.msra.mxu0 %vm621_vm10, %v2792_v0  ;;  %4798 = vmatpush3.msra.mxu1 %v2875_v1  ;;  %v4252_v1 = vld [vmem:[%s6262_s18 + $0x30] sm:$0xff] }
0x126f   :  { %4794 = vmatprep.mubr.msk.f32.mxu0 %vm5213_vm9, %v5212_v25  ;;  %4802 = vmatprep.subr.mxu0 %v5212_v25 }
0x1270   :  { %5004 = vmatprep.subr.bf16.mxu1 %v5003_v34 }
0x1271   :  { %4795 = vmatmul.mubr.msk.f32.vlgmr.msra.gmra.mrb[30].mxu0 %vm621_vm10, %v2704_v2  ;;  %v4253_v2 = vld [vmem:[%s6262_s18 + $0x38] sm:$0xff] }
0x1272   :  { %4803 = vmatpush3.msra.mxu0 %v2880_v3  ;;  %4804 = vmatprep.mubr.msk.f32.mxu0 %vm5213_vm9, %v5212_v25  ;;  %v5015_v3 = vpack.c.bf16 %v4253_v2, %v4252_v1 }
0x1340   :  { %v2955_v4 = vpop.f32.mrb[28].mxu0 }
0x1341   :  { %v3035_v5 = vmul.f32 0.25, %v2955_v4  ;;  %v4791_v6 = vpop.f32.mrb[29].mxu0 }
0x1343   :  { %v3037_v7 = vadd.f32 %v3035_v5, %v5525_v54 }
0x1344   :  { %v3031_v8 = vpop.f32.mrb[30].mxu0 }
0x1345   :  { %v3036_v9 = vmul.f32 0.25, %v3031_v8  ;;  %v4796_v10 = vpop.f32.mrb[31].mxu0  ;;  %v3039_v11 = vsel %vm790_vm11, %v3037_v7, -inf }
0x1346   :  { %3040 = vmax.xlane.f32.xlu1 %v3039_v11  ;;  %v4248_v11 = vld [vmem:[%s6260_s16 + $0x1] ss:$0 sm:$0xff] }
0x1347   :  { %v3038_v12 = vadd.f32 %v3036_v9, %v5522_v52 }
0x1349   :  { %v3042_v13 = vsel %vm790_vm11, %v3038_v12, -inf }
0x134a   :  { %3043 = vmax.xlane.f32.xlu0 %v3042_v13 }
0x13d3   :  { %v3041_v15 = vpop.xlane.xlu1 %3040 }
0x13d4   :  { %v3045_v16 = vsub.f32 %v3037_v7, %v3041_v15 }
0x13d6   :  { %v3047_v17 = vmul.f32 1.442695, %v3045_v16  ;;  %v4249_v16 = vld [vmem:[%s6261_s17 + $0x1] ss:$0 sm:$0xff] }
0x13d7   :  { %v3044_v18 = vpop.xlane.xlu0 %3043 }
0x13d8   :  { %5167 = vpow2.f32 %v3047_v17  ;;  %v3046_v20 = vsub.f32 %v3038_v12, %v3044_v18 }
0x13da   :  { %v3049_v21 = vmul.f32 1.442695, %v3046_v20 }
0x13dc   :  { %5169 = vpow2.f32 %v3049_v21 }
0x13e2   :  { %v5168_v54 = vpop.eup %5167 }
0x13e3   :  { %v3051_v22 = vsel %vm790_vm11, %v5168_v54, 0.0 }
0x13e4   :  { %3052 = vadd.xlane.f32.xlu1 %v3051_v22  ;;  %v4259_v22 = vld [vmem:[%s6264_s20 + $0x48] sm:$0xff] }
0x13e6   :  { %v5170_v23 = vpop.eup %5169 }
0x13e7   :  { %v3054_v24 = vsel %vm790_vm11, %v5170_v23, 0.0 }
0x13e8   :  { %3055 = vadd.xlane.f32.xlu0 %v3054_v24  ;;  %v4260_v24 = vld [vmem:[%s6264_s20 + $0x50] sm:$0xff] }
0x1471   :  { %v3053_v52 = vpop.xlane.xlu1 %3052 }
0x1472   :  { %5171 = vrcp.f32 %v3053_v52  ;;  %v4261_v52 = vld [vmem:[%s6264_s20 + $0x58] sm:$0xff] }
0x1475   :  { %v3056_v27 = vpop.xlane.xlu0 %3055 }
0x1476   :  { %5173 = vrcp.f32 %v3056_v27  ;;  %v5023_v27 = vpack.c.bf16 %v4261_v52, %v4260_v24  ;;  %v3700_v24 = vld [vmem:[%s6268_s24 + $0x60] sm:$0xff]  ;;  %v3691_v52 = vld [vmem:[%s6268_s24 + $0x18] sm:$0xff] }
0x147c   :  { %v5172_v28 = vpop.eup %5171 }
0x147d   :  { %v3058_v29 = vmul.f32 %v5172_v28, %v5168_v54  ;;  %v4258_v54 = vld [vmem:[%s6264_s20 + $0x40] sm:$0xff] }
0x147e   :  { %v4262_v28 = vld [vmem:[%s6264_s20 + $0x60] sm:$0xff] }
0x147f   :  { %4800 = vmatmul.mubr.msk.f32.vlgmr.msra.gmra.mrb[30].mxu1 %vm790_vm11, %v3058_v29  ;;  %v4263_v29 = vld [vmem:[%s6264_s20 + $0x68] sm:$0xff] }
0x1480   :  { %v5174_v30 = vpop.eup %5173  ;;  %5006 = vmatpush3.bf16.msra.mxu1 %v5003_v34  ;;  %v4255_v34 = vld [vmem:[%s6263_s19 + $0x1] ss:$0 sm:$0xff] }
0x1481   :  { %v3060_v31 = vmul.f32 %v5174_v30, %v5170_v23  ;;  %5008 = vmatprep.subr.bf16.mxu1 %v5007_v39  ;;  %v5019_v23 = vpack.c.bf16 %v4259_v22, %v4258_v54  ;;  %v5027_v30 = vpack.c.bf16 %v4263_v29, %v4262_v28  ;;  %v3701_v54 = vld [vmem:[%s6268_s24 + $0x68] sm:$0xff]  ;;  %v3696_v22 = vld [vmem:[%s6268_s24 + $0x40] sm:$0xff] }
0x1482   :  { %v5041_v28 = vpack.c.bf16 %v3700_v24, %v3696_v22  ;;  %v3694_v24 = vld [vmem:[%s6268_s24 + $0x30] sm:$0xff] }
0x1483   :  { %4805 = vmatmul.mubr.msk.f32.vlgmr.msra.gmra.mrb[32].mxu0 %vm790_vm11, %v3060_v31  ;;  %v4264_v31 = vld [vmem:[%s6264_s20 + $0x70] sm:$0xff] }
0x1484   :  { %v5031_v33 = vpack.c.bf16 %v4265_v32, %v4264_v31  ;;  %v3896_v31 = vld [vmem:[%s6270_s26 + $0x88] sm:$0xff]  ;;  %v3879_v32 = vld [vmem:[%s6270_s26] sm:$0xff] }
0x1552   :  { %v3130_v40 = vpop.f32.mrb[30].mxu1 }
0x1553   :  { %v4801_v41 = vpop.f32.mrb[31].mxu1  ;;  %4811 = vmatprep.mubr.msk.f32.mxu1 %vm621_vm10, %v3130_v40 }
0x1556   :  { %v3203_v42 = vpop.f32.mrb[32].mxu0 }
0x1557   :  { %v4806_v43 = vpop.f32.mrb[33].mxu0  ;;  %4812 = vmatmul.mubr.msk.f32.vlgmr.msra.gmra.mrb[32].mxu1 %vm621_vm10, %v3203_v42 }
0x1558   :  { %5010 = vmatpush3.bf16.msra.mxu1 %v5007_v39  ;;  %4818 = vmatprep.mubr.msk.f32.mxu1 %vm621_vm10, %v5848_v49 }
0x1559   :  { %5020 = vmatprep.subr.bf16.mxu1 %v5019_v23 }
0x155f   :  { %4819 = vmatmul.mubr.msk.f32.vlgmr.msra.gmra.mrb[32].mxu1 %vm621_vm10, %v5850_v53 }
0x1560   :  { %5022 = vmatpush3.bf16.msra.mxu1 %v5019_v23 }
0x1561   :  { %5024 = vmatprep.subr.bf16.mxu1 %v5023_v27 }
0x1564   :  { %5026 = vmatpush3.bf16.msra.mxu1 %v5023_v27  ;;  %v3695_v27 = vld [vmem:[%s6268_s24 + $0x38] sm:$0xff] }
0x1565   :  { %5028 = vmatprep.subr.bf16.mxu1 %v5027_v30  ;;  %v5043_v29 = vpack.c.bf16 %v3695_v27, %v3691_v52 }
0x1568   :  { %5030 = vmatpush3.bf16.msra.mxu1 %v5027_v30  ;;  %v3895_v30 = vld [vmem:[%s6270_s26 + $0x80] sm:$0xff] }
0x1569   :  { %5032 = vmatprep.subr.bf16.mxu1 %v5031_v33 }
0x156c   :  { %5034 = vmatpush3.bf16.msra.mxu1 %v5031_v33  ;;  %v5051_v33 = vpack.c.bf16 %v3896_v31, %v3895_v30  ;;  %v3698_v31 = vld [vmem:[%s6268_s24 + $0x50] sm:$0xff] }
0x156e   :  { %5052 = vmatprep.subr.bf16.mxu1 %v5051_v33 }
0x1632   :  { %v4820_v37 = vpop.f32.mrb[32].mxu1 }
0x1633   :  { %v3381_v47 = vadd.f32 %v4820_v37, %v4245_v44  ;;  %v3363_v48 = vpop.f32.mrb[33].mxu1 }
0x1634   :  { %v3380_v51 = vadd.f32 %v4245_v44, %v3363_v48 }
0x1635   :  { %v3383_v55 = vadd.f32 %v3381_v47, %v5748_v45 }
0x1636   :  { %v3382_v56 = vadd.f32 %v3380_v51, %v5746_v38  ;;  %v4250_v38 = vld [vmem:[%s6262_s18 + $0x20] sm:$0xff] }
0x1637   :  { %v3391_v19 = vsel %vm307_vm8, %v3383_v55, 0.0  ;;  %v5011_v0 = vpack.c.bf16 %v4251_v63, %v4250_v38 }
0x1638   :  { %3392 = vadd.xlane.f32.xlu0 %v3391_v19  ;;  %v3388_v49 = vsel %vm307_vm8, %v3382_v56, 0.0 }
0x1639   :  { %3389 = vadd.xlane.f32.xlu1 %v3388_v49  ;;  %5012 = vmatprep.subr.bf16.mxu0 %v5011_v0 }
0x163a   :  { %5014 = vmatpush3.bf16.msra.mxu0 %v5011_v0 }
0x163b   :  { %5016 = vmatprep.subr.bf16.mxu0 %v5015_v3 }
0x163e   :  { %5018 = vmatpush3.bf16.msra.mxu0 %v5015_v3 }
0x16c5   :  { %v3393_v14 = vpop.xlane.xlu0 %3392 }
0x16c6   :  { %v3395_v53 = vmul.f32 0.03125, %v3393_v14  ;;  %v3390_v57 = vpop.xlane.xlu1 %3389 }
0x16c7   :  { %v3394_v58 = vmul.f32 0.03125, %v3390_v57 }
0x16c8   :  { %v3397_v26 = vsub.f32 %v3383_v55, %v3395_v53 }
0x16c9   :  { %v3396_v59 = vsub.f32 %v3382_v56, %v3394_v58 }
0x16ca   :  { %v3399_v60 = vmul.f32 %v3397_v26, %v3397_v26 }
0x16cb   :  { %v3398_v61 = vmul.f32 %v3396_v59, %v3396_v59 }
0x16cc   :  { %v3403_v62 = vsel %vm307_vm8, %v3399_v60, 0.0  ;;  %v4267_v60 = vld [vmem:[%s6265_s21 + $0x1] ss:$0 sm:$0xff] }
0x16cd   :  { %3404 = vadd.xlane.f32.xlu0 %v3403_v62  ;;  %v3400_v45 = vsel %vm307_vm8, %v3398_v61, 0.0 }
0x16ce   :  { %3401 = vadd.xlane.f32.xlu1 %v3400_v45 }
0x175a   :  { %v3405_v4 = vpop.xlane.xlu0 %3404 }
0x175b   :  { %v3407_v5 = vmul.f32 0.03125, %v3405_v4  ;;  %v3402_v6 = vpop.xlane.xlu1 %3401 }
0x175c   :  { %v3406_v7 = vmul.f32 0.03125, %v3402_v6 }
0x175d   :  { %v3409_v8 = vadd.f32 1e-12, %v3407_v5 }
0x175e   :  { %v3408_v9 = vadd.f32 1e-12, %v3406_v7 }
0x175f   :  { %5175 = vrsqrt.f32 %v3409_v8 }
0x1760   :  { %5177 = vrsqrt.f32 %v3408_v9 }
0x1769   :  { %v5176_v10 = vpop.eup %5175 }
0x176a   :  { %v5178_v12 = vpop.eup %5177  ;;  %v3413_v13 = vmul.f32 %v5176_v10, %v3397_v26 }
0x176b   :  { %v3412_v15 = vmul.f32 %v5178_v12, %v3396_v59 }
0x176c   :  { %v3421_v17 = vmul.f32 %v4248_v11, %v3413_v13  ;;  %v3689_v13 = vld [vmem:[%s6268_s24 + $0x8] sm:$0xff] }
0x176d   :  { %v3420_v18 = vmul.f32 %v4248_v11, %v3412_v15  ;;  %v3693_v15 = vld [vmem:[%s6268_s24 + $0x28] sm:$0xff] }
0x176e   :  { %v3429_v21 = vadd.f32 %v4249_v16, %v3421_v17  ;;  %v3688_v17 = vld [vmem:[%s6268_s24] sm:$0xff] }
0x176f   :  { %v3428_v20 = vadd.f32 %v4249_v16, %v3420_v18  ;;  %v5035_v16 = vpack.c.bf16 %v3693_v15, %v3689_v13  ;;  %v3692_v18 = vld [vmem:[%s6268_s24 + $0x20] sm:$0xff] }
0x1771   :  { %4829 = vmatprep.mubr.msk.f32.mxu0 %vm307_vm8, %v3428_v20  ;;  %5036 = vmatprep.subr.bf16.mxu0 %v5035_v16  ;;  %v4272_v16 = vld [vmem:[%s6266_s22 + $0x1] ss:$0 sm:$0xff] }
0x1772   :  { %4830 = vmatmul.mubr.msk.f32.vlgmr.msra.gmra.mrb[34].mxu0 %vm307_vm8, %v3429_v21 }
0x1773   :  { %3797 = vmatprep.mubr.f32.mxu0 %v5212_v25 }
0x1845   :  { %v4831_v35 = vpop.f32.mrb[34].mxu0 }
0x1846   :  { %v3521_v36 = vadd.f32 %v4831_v35, %v4255_v34  ;;  %v3515_v39 = vpop.f32.mrb[35].mxu0  ;;  %v3897_v35 = vld [vmem:[%s6270_s26 + $0x90] sm:$0xff] }
0x1847   :  { %v3516_v40 = vadd.f32 %v4255_v34, %v3515_v39  ;;  %v3880_v34 = vld [vmem:[%s6270_s26 + $0x8] sm:$0xff] }
0x1848   :  { %v3525_v41 = vmul.f32 %v3521_v36, %v3521_v36  ;;  %v5053_v39 = vpack.c.bf16 %v3880_v34, %v3879_v32  ;;  %v3702_v32 = vld [vmem:[%s6268_s24 + $0x70] sm:$0xff]  ;;  %v3927_v34 = vld [vmem:[%s6270_s26 + $0x180] sm:$0xff] }
0x1849   :  { %v3524_v42 = vmul.f32 %v3516_v40, %v3516_v40 }
0x184a   :  { %v3527_v43 = vmul.f32 %v3525_v41, %v3521_v36  ;;  %v3881_v41 = vld [vmem:[%s6270_s26 + $0x10] sm:$0xff] }
0x184b   :  { %v3526_v44 = vmul.f32 %v3524_v42, %v3516_v40  ;;  %v3882_v42 = vld [vmem:[%s6270_s26 + $0x18] sm:$0xff] }
0x184c   :  { %v3529_v37 = vmul.f32 0.044715, %v3527_v43  ;;  %v3899_v43 = vld [vmem:[%s6270_s26 + $0xa0] sm:$0xff] }
0x184d   :  { %v3528_v47 = vmul.f32 0.044715, %v3526_v44  ;;  %v3900_v44 = vld [vmem:[%s6270_s26 + $0xa8] sm:$0xff] }
0x184e   :  { %v3531_v48 = vadd.f32 %v3529_v37, %v3521_v36  ;;  %v5057_v37 = vpack.c.bf16 %v3882_v42, %v3881_v41  ;;  %v3912_v41 = vld [vmem:[%s6270_s26 + $0x108] sm:$0xff]  ;;  %v3929_v42 = vld [vmem:[%s6270_s26 + $0x190] sm:$0xff] }
0x184f   :  { %v3530_v51 = vadd.f32 %v3528_v47, %v3516_v40  ;;  %v5059_v47 = vpack.c.bf16 %v3900_v44, %v3899_v43  ;;  %v3930_v43 = vld [vmem:[%s6270_s26 + $0x198] sm:$0xff] }
0x1850   :  { %v3533_v55 = vmul.f32 0.7978846, %v3531_v48  ;;  %v3883_v48 = vld [vmem:[%s6270_s26 + $0x20] sm:$0xff]  ;;  %v5087_v44 = vpack.c.bf16 %v3930_v43, %v3929_v42 }
0x1851   :  { %v3532_v56 = vmul.f32 0.7978846, %v3530_v51  ;;  %v3884_v51 = vld [vmem:[%s6270_s26 + $0x28] sm:$0xff] }
0x1852   :  { %5179 = vtanh.f32 %v3533_v55  ;;  %v3901_v55 = vld [vmem:[%s6270_s26 + $0xb0] sm:$0xff] }
0x1853   :  { %5181 = vtanh.f32 %v3532_v56  ;;  %v3902_v56 = vld [vmem:[%s6270_s26 + $0xb8] sm:$0xff] }
0x185c   :  { %v5180_v19 = vpop.eup %5179 }
0x185d   :  { %v5182_v49 = vpop.eup %5181  ;;  %v3537_v14 = vadd.f32 1.0, %v5180_v19  ;;  %v5061_v19 = vpack.c.bf16 %v3884_v51, %v3883_v48  ;;  %v3931_v48 = vld [vmem:[%s6270_s26 + $0x1a0] sm:$0xff]  ;;  %v3932_v51 = vld [vmem:[%s6270_s26 + $0x1a8] sm:$0xff] }
0x185e   :  { %v3536_v53 = vadd.f32 1.0, %v5182_v49  ;;  %v5063_v49 = vpack.c.bf16 %v3902_v56, %v3901_v55  ;;  %v5091_v56 = vpack.c.bf16 %v3932_v51, %v3931_v48 }
0x185f   :  { %v3539_v57 = vmul.f32 0.5, %v3537_v14  ;;  %v3885_v14 = vld [vmem:[%s6270_s26 + $0x30] sm:$0xff] }
0x1860   :  { %v3538_v58 = vmul.f32 0.5, %v3536_v53  ;;  %v3886_v53 = vld [vmem:[%s6270_s26 + $0x38] sm:$0xff] }
0x1861   :  { %v3541_v59 = vmul.f32 %v3539_v57, %v3521_v36  ;;  %v3898_v36 = vld [vmem:[%s6270_s26 + $0x98] sm:$0xff]  ;;  %v3903_v57 = vld [vmem:[%s6270_s26 + $0xc0] sm:$0xff] }
0x1862   :  { %v3540_v26 = vmul.f32 %v3538_v58, %v3516_v40  ;;  %v5055_v40 = vpack.c.bf16 %v3898_v36, %v3897_v35  ;;  %v3904_v58 = vld [vmem:[%s6270_s26 + $0xc8] sm:$0xff]  ;;  %v5049_v36 = vpack.c.bf16 %v3702_v32, %v3698_v31  ;;  %v3712_v31 = vsub.s32 1, %v5516_v46 }
0x1863   :  { %v3928_v35 = vld [vmem:[%s6270_s26 + $0x188] sm:$0xff] }
0x1864   :  { %4848 = vmatprep.mubr.msk.f32.mxu1 %vm1894_vm12, %v3540_v26  ;;  %v5065_v26 = vpack.c.bf16 %v3886_v53, %v3885_v14  ;;  %v3933_v14 = vld [vmem:[%s6270_s26 + $0x1b0] sm:$0xff]  ;;  %v3934_v53 = vld [vmem:[%s6270_s26 + $0x1b8] sm:$0xff] }
0x1865   :  { %4849 = vmatmul.mubr.msk.f32.vlgmr.msra.gmra.mrb[34].mxu1 %vm1894_vm12, %v3541_v59  ;;  %v5067_v59 = vpack.c.bf16 %v3904_v58, %v3903_v57  ;;  %v5095_v58 = vpack.c.bf16 %v3934_v53, %v3933_v14 }
0x1866   :  { %5054 = vmatpush3.bf16.msra.mxu1 %v5053_v39  ;;  %v5083_v39 = vpack.c.bf16 %v3928_v35, %v3927_v34 }
0x1867   :  { %5056 = vmatprep.subr.bf16.mxu1 %v5055_v40  ;;  %v3911_v40 = vld [vmem:[%s6270_s26 + $0x100] sm:$0xff] }
0x186a   :  { %5058 = vmatpush3.bf16.msra.mxu1 %v5057_v37  ;;  %v3913_v37 = vld [vmem:[%s6270_s26 + $0x110] sm:$0xff] }
0x186b   :  { %5060 = vmatprep.subr.bf16.mxu1 %v5059_v47  ;;  %v3914_v47 = vld [vmem:[%s6270_s26 + $0x118] sm:$0xff] }
0x186c   :  { %v5089_v55 = vpack.c.bf16 %v3914_v47, %v3913_v37 }
0x186e   :  { %5062 = vmatpush3.bf16.msra.mxu1 %v5061_v19  ;;  %v3915_v19 = vld [vmem:[%s6270_s26 + $0x120] sm:$0xff] }
0x186f   :  { %5064 = vmatprep.subr.bf16.mxu1 %v5063_v49  ;;  %v3916_v49 = vld [vmem:[%s6270_s26 + $0x128] sm:$0xff] }
0x1870   :  { %v5093_v57 = vpack.c.bf16 %v3916_v49, %v3915_v19 }
0x1872   :  { %5066 = vmatpush3.bf16.msra.mxu1 %v5065_v26  ;;  %v3917_v26 = vld [vmem:[%s6270_s26 + $0x130] sm:$0xff] }
0x1873   :  { %5068 = vmatprep.subr.bf16.mxu1 %v5067_v59  ;;  %v3918_v59 = vld [vmem:[%s6270_s26 + $0x138] sm:$0xff] }
0x1938   :  { %v4850_v61 = vpop.f32.mrb[34].mxu1 }
0x1939   :  { %v3637_v62 = vadd.f32 %v4850_v61, %v4267_v60  ;;  %v3631_v45 = vpop.f32.mrb[35].mxu1  ;;  %v3888_v61 = vld [vmem:[%s6270_s26 + $0x48] sm:$0xff] }
0x193a   :  { %v3632_v38 = vadd.f32 %v4267_v60, %v3631_v45  ;;  %v3887_v60 = vld [vmem:[%s6270_s26 + $0x40] sm:$0xff]  ;;  %v3906_v45 = vld [vmem:[%s6270_s26 + $0xd8] sm:$0xff] }
0x193b   :  { %v3641_v63 = vadd.f32 %v3637_v62, %v3429_v21  ;;  %v3697_v21 = vld [vmem:[%s6268_s24 + $0x48] sm:$0xff]  ;;  %v3905_v62 = vld [vmem:[%s6270_s26 + $0xd0] sm:$0xff] }
0x193c   :  { %v3640_v0 = vadd.f32 %v3632_v38, %v3428_v20  ;;  %v5037_v20 = vpack.c.bf16 %v3692_v18, %v3688_v17  ;;  %v5039_v23 = vpack.c.bf16 %v3701_v54, %v3697_v21  ;;  %v5069_v38 = vpack.c.bf16 %v3888_v61, %v3887_v60  ;;  %v4273_v21 = vld [vmem:[%s6267_s23 + $0x1] ss:$0 sm:$0xff]  ;;  %v3936_v61 = vld [vmem:[%s6270_s26 + $0x1c8] sm:$0xff] }
0x193d   :  { %v3649_v1 = vsel %vm307_vm8, %v3641_v63, 0.0  ;;  %v3935_v60 = vld [vmem:[%s6270_s26 + $0x1c0] sm:$0xff] }
0x193e   :  { %3650 = vadd.xlane.f32.xlu1 %v3649_v1  ;;  %v3646_v2 = vsel %vm307_vm8, %v3640_v0, 0.0  ;;  %5038 = vmatpush1.bf16.msra.mxu0 %v5037_v20  ;;  %v3890_v1 = vld [vmem:[%s6270_s26 + $0x58] sm:$0xff] }
0x193f   :  { %3647 = vadd.xlane.f32.xlu0 %v3646_v2  ;;  %5040 = vmatprep.subr.bf16.mxu0 %v5039_v23  ;;  %v3907_v2 = vld [vmem:[%s6270_s26 + $0xe0] sm:$0xff]  ;;  %v3690_v23 = vld [vmem:[%s6268_s24 + $0x10] sm:$0xff] }
0x1940   :  { %5070 = vmatpush3.bf16.msra.mxu1 %v5069_v38  ;;  %v3919_v38 = vld [vmem:[%s6270_s26 + $0x140] sm:$0xff] }
0x1942   :  { %5042 = vmatpush1.bf16.msra.mxu0 %v5041_v28 }
0x1943   :  { %5044 = vmatprep.subr.bf16.mxu0 %v5043_v29  ;;  %v5045_v29 = vpack.c.bf16 %v3694_v24, %v3690_v23  ;;  %v3924_v23 = vld [vmem:[%s6270_s26 + $0x168] sm:$0xff] }
0x19cb   :  { %v3651_v3 = vpop.xlane.xlu1 %3650 }
0x19cc   :  { %v3653_v4 = vmul.f32 0.03125, %v3651_v3  ;;  %v3648_v5 = vpop.xlane.xlu0 %3647  ;;  %v3908_v3 = vld [vmem:[%s6270_s26 + $0xe8] sm:$0xff] }
0x19cd   :  { %v3652_v6 = vmul.f32 0.03125, %v3648_v5  ;;  %v5075_v5 = vpack.c.bf16 %v3908_v3, %v3907_v2  ;;  %v3892_v2 = vld [vmem:[%s6270_s26 + $0x68] sm:$0xff] }
0x19ce   :  { %v5961_v7 = vsub.f32 %v3641_v63, %v3653_v4  ;;  %v5071_v63 = vpack.c.bf16 %v3906_v45, %v3905_v62  ;;  %v5097_v62 = vpack.c.bf16 %v3918_v59, %v3917_v26  ;;  %v5099_v45 = vpack.c.bf16 %v3936_v61, %v3935_v60 }
0x19cf   :  { %v5963_v8 = vsub.f32 %v3640_v0, %v3652_v6  ;;  %v3889_v0 = vld [vmem:[%s6270_s26 + $0x50] sm:$0xff] }
0x19d0   :  { %v3657_v9 = vmul.f32 %v5961_v7, %v5961_v7  ;;  %v5073_v4 = vpack.c.bf16 %v3890_v1, %v3889_v0  ;;  %5072 = vmatprep.subr.bf16.mxu1 %v5071_v63  ;;  %v3920_v63 = vld [vmem:[%s6270_s26 + $0x148] sm:$0xff]  ;;  %v3891_v1 = vld [vmem:[%s6270_s26 + $0x60] sm:$0xff] }
0x19d1   :  { %v3656_v10 = vmul.f32 %v5963_v8, %v5963_v8  ;;  %v5101_v0 = vpack.c.bf16 %v3920_v63, %v3919_v38  ;;  %v5077_v3 = vpack.c.bf16 %v3892_v2, %v3891_v1 }
0x19d2   :  { %v3661_v11 = vsel %vm307_vm8, %v3657_v9, 0.0  ;;  %5074 = vmatpush3.bf16.msra.mxu1 %v5073_v4  ;;  %v3937_v4 = vld [vmem:[%s6270_s26 + $0x1d0] sm:$0xff] }
0x19d3   :  { %3662 = vadd.xlane.f32.xlu1 %v3661_v11  ;;  %v3658_v12 = vsel %vm307_vm8, %v3656_v10, 0.0  ;;  %5076 = vmatprep.subr.bf16.mxu1 %v5075_v5  ;;  %v3938_v5 = vld [vmem:[%s6270_s26 + $0x1d8] sm:$0xff] }
0x19d4   :  { %3659 = vadd.xlane.f32.xlu0 %v3658_v12 }
0x19d6   :  { %5078 = vmatpush3.bf16.msra.mxu1 %v5077_v3 }
0x1a60   :  { %v3663_v6 = vpop.xlane.xlu1 %3662 }
0x1a61   :  { %v3665_v9 = vmul.f32 0.03125, %v3663_v6  ;;  %v3660_v10 = vpop.xlane.xlu0 %3659  ;;  %v5103_v6 = vpack.c.bf16 %v3938_v5, %v3937_v4 }
0x1a62   :  { %v3664_v11 = vmul.f32 0.03125, %v3660_v10  ;;  %v3910_v10 = vld [vmem:[%s6270_s26 + $0xf8] sm:$0xff] }
0x1a63   :  { %v3667_v12 = vadd.f32 1e-12, %v3665_v9  ;;  %v3909_v9 = vld [vmem:[%s6270_s26 + $0xf0] sm:$0xff] }
0x1a64   :  { %v3666_v13 = vadd.f32 1e-12, %v3664_v11  ;;  %v3921_v11 = vld [vmem:[%s6270_s26 + $0x150] sm:$0xff] }
0x1a65   :  { %5183 = vrsqrt.f32 %v3667_v12  ;;  %v5079_v12 = vpack.c.bf16 %v3910_v10, %v3909_v9 }
0x1a66   :  { %5185 = vrsqrt.f32 %v3666_v13  ;;  %v3922_v13 = vld [vmem:[%s6270_s26 + $0x158] sm:$0xff] }
0x1a67   :  { %5080 = vmatprep.subr.bf16.mxu1 %v5079_v12 }
0x1a6f   :  { %v5184_v15 = vpop.eup %5183 }
0x1a70   :  { %v5186_v17 = vpop.eup %5185  ;;  %v3671_v18 = vmul.f32 %v5184_v15, %v5961_v7  ;;  %v3699_v7 = vld [vmem:[%s6268_s24 + $0x58] sm:$0xff]  ;;  %v3893_v15 = vld [vmem:[%s6270_s26 + $0x70] sm:$0xff] }
0x1a71   :  { %v3670_v20 = vmul.f32 %v5186_v17, %v5963_v8  ;;  %v3703_v8 = vld [vmem:[%s6268_s24 + $0x78] sm:$0xff]  ;;  %v5105_v17 = vpack.c.bf16 %v3922_v13, %v3921_v11 }
0x1a72   :  { %v3679_v54 = vmul.f32 %v4272_v16, %v3671_v18  ;;  %v5047_v30 = vpack.c.bf16 %v3703_v8, %v3699_v7  ;;  %v3942_v7 = vld [vmem:[%s6270_s26 + $0x1f8] sm:$0xff] }
0x1a73   :  { %v3678_v22 = vmul.f32 %v4272_v16, %v3670_v20  ;;  %v3894_v16 = vld [vmem:[%s6270_s26 + $0x78] sm:$0xff]  ;;  %v3939_v20 = vld [vmem:[%s6270_s26 + $0x1e0] sm:$0xff] }
0x1a74   :  { %v3687_v52 = vadd.f32 %v4273_v21, %v3679_v54  ;;  %v5081_v18 = vpack.c.bf16 %v3894_v16, %v3893_v15 }
0x1a75   :  { %v3686_v27 = vadd.f32 %v4273_v21, %v3678_v22  ;;  %v3940_v21 = vld [vmem:[%s6270_s26 + $0x1e8] sm:$0xff]  ;;  %v3923_v22 = vld [vmem:[%s6270_s26 + $0x160] sm:$0xff] }
0x1a76   :  { %v3728_v28 = vrot.slane %v3687_v52, 7  ;;  %5082 = vmatpush3.bf16.msra.mxu1 %v5081_v18  ;;  %v5107_v54 = vpack.c.bf16 %v3940_v21, %v3939_v20  ;;  %v5109_v24 = vpack.c.bf16 %v3924_v23, %v3923_v22  ;;  %v3941_v52 = vld [vmem:[%s6270_s26 + $0x1f0] sm:$0xff] }
0x1a77   :  { %v5111_v8 = vpack.c.bf16 %v3942_v7, %v3941_v52 }
0x1a78   :  { %v3730_v33 = vsel %vm3729_vm13, %v3728_v28, %v3686_v27  ;;  %v3925_v27 = vld [vmem:[%s6270_s26 + $0x170] sm:$0xff]  ;;  %v3926_v28 = vld [vmem:[%s6270_s26 + $0x178] sm:$0xff] }
0x1a79   :  { %4274 = vmatmul.mubr.msk.f32.vlgmr.msra.gmra.mrb[36].mxu0 %vm307_vm8, %v3730_v33 }
0x1a7a   :  { %5046 = vmatpush1.bf16.msra.mxu0 %v5045_v29  ;;  %3868 = vmatprep.mubr.f32.mxu0 %v5212_v25  ;;  %v5085_v25 = vpack.c.bf16 %v3912_v41, %v3911_v40  ;;  %v5113_v29 = vpack.c.bf16 %v3926_v28, %v3925_v27  ;;  %v3720_v41 = vsub.s32 3, %v5516_v46 }
0x1a7b   :  { %5048 = vmatprep.subr.bf16.mxu0 %v5047_v30  ;;  %v3704_v30 = vld [vmem:[%s6269_s25] sm:$0xf] }
0x1a7c   :  { %v3709_v32 = vrot.slane %v3704_v30, %v5519_v50 }
0x1a7e   :  { %5050 = vmatpush1.bf16.msra.mxu0 %v5049_v36 }
0x1a7f   :  { %5084 = vmatprep.subr.bf16.mxu0 %v5083_v39  ;;  %v3716_v39 = vsub.s32 2, %v5516_v46  ;;  %v4276_v46 = vld [vmem:[%s6271_s27] ss:$0 sm:$0xff] }
0x1a81   :  { %4275 = vmatmul.mubr.msk.f32.vlgmr.msra.gmra.mrb[38].mxu0 %vm307_vm8, %v3730_v33  ;;  %v3713_v33 = vrot.slane %v3704_v30, %v3712_v31 }
0x1a82   :  { %5086 = vmatpush3.bf16.msra.mxu0 %v5085_v25  ;;  %v3717_v25 = vrot.slane %v3704_v30, %v3716_v39 }
0x1a83   :  { %5088 = vmatprep.subr.bf16.mxu0 %v5087_v44  ;;  %v3721_v44 = vrot.slane %v3704_v30, %v3720_v41 }
0x1a86   :  { %5090 = vmatpush3.bf16.msra.mxu0 %v5089_v55 }
0x1a87   :  { %5092 = vmatprep.subr.bf16.mxu0 %v5091_v56 }
0x1a8a   :  { %5094 = vmatpush3.bf16.msra.mxu0 %v5093_v57 }
0x1a8b   :  { %5096 = vmatprep.subr.bf16.mxu0 %v5095_v58 }
0x1a8e   :  { %5098 = vmatpush3.bf16.msra.mxu0 %v5097_v62 }
0x1a8f   :  { %5100 = vmatprep.subr.bf16.mxu0 %v5099_v45 }
0x1a92   :  { %5102 = vmatpush3.bf16.msra.mxu0 %v5101_v0 }
0x1a93   :  { %5104 = vmatprep.subr.bf16.mxu0 %v5103_v6 }
0x1a96   :  { %5106 = vmatpush3.bf16.msra.mxu0 %v5105_v17 }
0x1a97   :  { %5108 = vmatprep.subr.bf16.mxu0 %v5107_v54 }
0x1a9a   :  { %5110 = vmatpush3.bf16.msra.mxu0 %v5109_v24 }
0x1a9b   :  { %5112 = vmatprep.subr.bf16.mxu0 %v5111_v8 }
0x1a9e   :  { %5114 = vmatpush3.bf16.msra.mxu0 %v5113_v29 }
0x1b4c   :  { %v3799_v34 = vpop.f32.mrb[36].mxu0 }
0x1b4d   :  { %v3800_v35 = vadd.f32 %v3799_v34, %v3709_v32  ;;  %v3801_v36 = vpop.f32.mrb[37].mxu0 }
0x1b4e   :  { %v3802_v40 = vadd.f32 %v3801_v36, %v3713_v33 }
0x1b4f   :  { %v3875_v43 = vmax.f32 %v3800_v35, 0.0 }
0x1b50   :  { %v3876_v42 = vmax.f32 %v3802_v40, 0.0 }
0x1b52   :  { %4014 = vmatprep.mubr.f32.mxu1 %v3876_v42 }
0x1b53   :  { %4015 = vmatmul.mubr.f32.vlgmr.msra.gmra.mrb[36].mxu1 %v3875_v43 }
0x1b54   :  { %v3870_v37 = vpop.f32.mrb[38].mxu0 }
0x1b55   :  { %v3871_v47 = vadd.f32 %v3870_v37, %v3717_v25  ;;  %v3872_v48 = vpop.f32.mrb[39].mxu0 }
0x1b56   :  { %v3873_v51 = vadd.f32 %v3872_v48, %v3721_v44 }
0x1b57   :  { %v3877_v55 = vmax.f32 %v3871_v47, 0.0 }
0x1b58   :  { %v3878_v50 = vmax.f32 %v3873_v51, 0.0 }
0x1b5a   :  { %4084 = vmatprep.mubr.f32.mxu0 %v3878_v50 }
0x1b5b   :  { %4085 = vmatmul.mubr.f32.vlgmr.msra.gmra.mrb[40].mxu0 %v3877_v55 }
0x1c26   :  { %v4479_v56 = vpop.f32.mrb[36].mxu1 }
0x1c27   :  { %v4480_v19 = vpop.f32.mrb[37].mxu1 }
0x1c28   :  { %v4481_v49 = vadd.f32 %v4480_v19, %v4479_v56 }
0x1c2a   :  { %v4017_v57 = vadd.f32 %v4481_v49, %v4276_v46 }
0x1c2e   :  { %v4514_v14 = vpop.f32.mrb[40].mxu0 }
0x1c2f   :  { %v4515_v53 = vpop.f32.mrb[41].mxu0 }
0x1c30   :  { %v4516_v58 = vadd.f32 %v4515_v53, %v4514_v14 }
0x1c32   :  { %v4087_v26 = vadd.f32 %v4516_v58, %v4017_v57 }
0x1c34   :  { %4091 = vst.msk [vmem:[#allocation2] sm:$0x3] %vm4090_vm14, %v4087_v26 }
0x1c35   :  { %5198 = shalt.err (!%p5195_p4)
}
0x1c36   :  { %s5199_s27 = scalar_lea.hbm %s6272_s28, 32 }
0x1c37   :  { %p5200_p5 = scmp.ne.s32.totalorder %s6272_s28, %s5199_s27  ;;  %p5203_p6 = scmp.lt.u32.totalorder %s5199_s27, %s6272_s28 }
0x1c39   :  { %p5205_p7 = pnand %p5203_p6, %p5200_p5 }
0x1c3b   :  { %5208 = shalt.err (!%p5205_p7)
}
0x1c3c   :  { %4101 = dma.vmem_to_hbm [thread:$0]  %s4099_s30, 32, %s6272_s28, [#allocation3]  }
0x1c3d   :  { %5209 = dma.done.wait [#allocation3], 32  }
0x1c3e   :  { %5210 = vsyncadd [#allocation3], 4294967264 }
0x1c3f   :  { %4105 = vsyncpa [#allocation3], 1 }

</bundles_post_ra>
